<compile_context>
chip_gen: v5e
topology: v5e:2x2
jax: 0.10.0
libtpu: 0.0.40
codegen_flags: <defaults>
</compile_context>

<pallas_src>
import functools

import jax
import jax.numpy as jnp
from jax import lax
from jax.experimental import pallas as pl
from jax.experimental.pallas import tpu as pltpu

LEAKY_SLOPE = 0.1   # module uses torch.nn.LeakyReLU(0.1) (the `act` kwarg is ignored)
GN_EPS = 1e-5       # GraphNorm eps

# High-precision dot for host-side weight folding and the pure-JAX reference.
_hdot = functools.partial(jnp.dot, precision=jax.lax.Precision.HIGHEST)


def _round_up(v, m):
    return ((v + m - 1) // m) * m


def _leaky_relu(x):
    return jnp.where(x > 0, x, LEAKY_SLOPE * x)


def interaction_kernel(
    # per-edge-tile operands (pipelined over the edge-block grid axis)
    f1_ref, gate_ref, src_ref, dst_ref,
    # resident operands (constant index maps -> fetched once, stay in VMEM)
    x_ref, bm_ref, bt_ref, wf1_ref, wconv_ref, wcat_ref, vec_ref,
    # output (resident, written once on the last grid step)
    out_ref,
    # VMEM accumulators, persistent across the edge-block grid axis
    agg1_ref, agg2_ref,
):
    dot = functools.partial(jnp.dot, preferred_element_type=jnp.float32)
    te = f1_ref.shape[0]
    n_pad, hp = x_ref.shape
    eb = pl.program_id(0)

    @pl.when(eb == 0)
    def _init():
        agg1_ref[...] = jnp.zeros_like(agg1_ref)
        agg2_ref[...] = jnp.zeros_like(agg2_ref)

    # ------------- edge phase: one TE-edge tile per grid step -------------
    gate = gate_ref[...]                                       # [TE, Hp]
    # feature1 = lin_feature1(feature1) * gate_edge   (two linears folded on host)
    f1 = dot(f1_ref[...], wf1_ref[...]) * gate                 # [TE, Hp]

    # x_j = x[src]: selector built in registers from the index tile (no HBM
    # one-hot, no astype of a loaded operand).  Padded edges have f1 == 0.
    src = src_ref[...]                                         # [TE, 1] int32
    gsel = jnp.where(src == lax.broadcasted_iota(jnp.int32, (te, n_pad), 1),
                     1.0, 0.0)                                 # [TE, Npad]
    xj = dot(gsel, x_ref[...])                                 # [TE, Hp]

    t = f1 * xj                                                # conv1 message
    # conv2 message is (feature1*gate)*x_j == t*gate (one fewer mul per element)
    dst = dst_ref[...]                                         # [1, TE] int32
    ssel = jnp.where(lax.broadcasted_iota(jnp.int32, (n_pad, te), 0) == dst,
                     1.0, 0.0)                                 # [Npad, TE]
    agg1_ref[...] += dot(ssel, t)                              # scatter-add at dst
    agg2_ref[...] += dot(ssel, t * gate)

    # ------------- node phase: once, after the last edge tile -------------
    @pl.when(eb == pl.num_programs(0) - 1)
    def _finish():
        x = x_ref[...]                                         # [Npad, Hp]
        wl1 = wconv_ref[pl.ds(0 * hp, hp), :]
        wr1 = wconv_ref[pl.ds(1 * hp, hp), :]
        wl2 = wconv_ref[pl.ds(2 * hp, hp), :]
        wr2 = wconv_ref[pl.ds(3 * hp, hp), :]
        b1 = vec_ref[pl.ds(0, 1), :]
        b2 = vec_ref[pl.ds(1, 1), :]
        bcat = vec_ref[pl.ds(2, 1), :]
        gamma = vec_ref[pl.ds(3, 1), :]
        beta = vec_ref[pl.ds(4, 1), :]
        mscale = vec_ref[pl.ds(5, 1), :]

        # conv{1,2}.lin_l / lin_r folded with lin{1,2}; split Hp x Hp matmuls.
        h1 = _leaky_relu(dot(agg1_ref[...], wl1) + dot(x, wr1) + b1)
        h2 = _leaky_relu(dot(agg2_ref[...], wl2) + dot(x, wr2) + b2)
        # lin_cat(cat([h1, h2], dim=1)) as two stacked matmuls.
        h = dot(h1, wcat_ref[pl.ds(0, hp), :]) + dot(h2, wcat_ref[pl.ds(hp, hp), :]) + bcat

        # GraphNorm: bm already carries 1/count per graph; gamma folded at graph
        # granularity (exact because bt rows are one-hot); rsqrt-multiply.
        bm = bm_ref[...]                                       # [NGp, Npad]
        bt = bt_ref[...]                                       # [Npad, NGp]
        mean_g = dot(bm, h)                                    # [NGp, Hp]
        centered = h - dot(bt, mean_g) * mscale
        var_g = dot(bm, centered * centered)                   # [NGp, Hp]
        inv_std_g = lax.rsqrt(var_g + GN_EPS) * gamma          # [NGp, Hp]
        out_ref[...] = centered * dot(bt, inv_std_g) + beta


def _vmem_limit_bytes(working_set_bytes):
    # Size the scoped-VMEM limit from the real working set, capped by the actual
    # chip's physical VMEM (v5e/v6e: 128 MiB, v7x: 64 MiB per TensorCore).
    try:
        cap = int(pltpu.get_tpu_info().vmem_capacity_bytes)
    except Exception:          # conservative fallback: assume v7x-sized VMEM
        cap = 64 << 20
    want = max(2 * working_set_bytes + (8 << 20), 32 << 20)
    return int(min(want, cap - (8 << 20)))


def simple_interaction_block(x, gate_edge, feature1, feature2, edge_index, batch,
                             params, num_graphs):
    del feature2  # dead in the reference forward (immediately overwritten by f1*gate)
    N, H = x.shape
    E = edge_index.shape[1]
    F1 = feature1.shape[1]
    p = params

    Hp = _round_up(H, 128)               # lane-dense channel width
    F1p = _round_up(F1, 128)             # aligned K for the lin_feature1 matmul
    Npad = _round_up(N, 8)               # sublane-aligned node count
    NGp = _round_up(num_graphs + 1, 8)   # +1 bucket for padded nodes, sublane aligned
    TE = min(256, _round_up(E, 128))     # edge tile (lane-aligned for dst row tile)
    Epad = _round_up(E, TE)
    EB = Epad // TE

    def pad2(a, rows, cols):
        return jnp.pad(a, ((0, rows - a.shape[0]), (0, cols - a.shape[1])))

    # ------------------- host-side exact weight folding -------------------
    wf1 = _hdot(p["w1a"], p["w1b"])                    # lin_feature1: [F1, H]
    WL1 = _hdot(p["wl1"], p["wlin1"])                  # conv1.lin_l ∘ lin1
    WR1 = _hdot(p["wr1"], p["wlin1"])                  # conv1.lin_r ∘ lin1
    B1 = _hdot(p["bl1"], p["wlin1"]) + p["blin1"]
    WL2 = _hdot(p["wl2"], p["wlin2"])
    WR2 = _hdot(p["wr2"], p["wlin2"])
    B2 = _hdot(p["bl2"], p["wlin2"]) + p["blin2"]

    wf1p = pad2(wf1, F1p, Hp)                                              # [F1p, Hp]
    wconv = jnp.concatenate([pad2(WL1, Hp, Hp), pad2(WR1, Hp, Hp),
                             pad2(WL2, Hp, Hp), pad2(WR2, Hp, Hp)], axis=0)  # [4Hp, Hp]
    wcat = jnp.concatenate([pad2(p["wcat_a"], Hp, Hp),
                            pad2(p["wcat_b"], Hp, Hp)], axis=0)            # [2Hp, Hp]
    vec = pad2(jnp.concatenate([B1, B2, p["bcat"], p["gamma"], p["beta"],
                                p["mean_scale"]], axis=0), 8, Hp)          # [8, Hp]

    # ----------------------- padded data-side operands --------------------
    xp = pad2(x, Npad, Hp)
    f1in = pad2(feature1, Epad, F1p)                   # padded edges are all-zero
    gp = pad2(gate_edge, Epad, Hp)
    src = jnp.pad(edge_index[0].astype(jnp.int32), (0, Epad - E)).reshape(Epad, 1)
    dst = jnp.pad(edge_index[1].astype(jnp.int32), (0, Epad - E)).reshape(1, Epad)

    # GraphNorm pooling matrices (tiny): padded nodes go to graph `num_graphs`
    # so they never touch real statistics; 1/count prefolded into bm.
    batch_pad = jnp.concatenate([batch.astype(jnp.int32),
                                 jnp.full((Npad - N,), num_graphs, jnp.int32)])
    bt = jax.nn.one_hot(batch_pad, NGp, dtype=jnp.float32)          # [Npad, NGp]
    counts = jnp.maximum(jnp.sum(bt, axis=0, keepdims=True), 1.0)   # empty-graph guard
    bm = (bt / counts).T                                            # [NGp, Npad]

    ins = (f1in, gp, src, dst, xp, bm, bt, wf1p, wconv, wcat, vec)
    in_specs = [
        pl.BlockSpec((TE, F1p), lambda e: (e, 0)),     # feature1 tile (pipelined)
        pl.BlockSpec((TE, Hp), lambda e: (e, 0)),      # gate tile     (pipelined)
        pl.BlockSpec((TE, 1), lambda e: (e, 0)),       # src indices   (pipelined)
        pl.BlockSpec((1, TE), lambda e: (0, e)),       # dst indices   (pipelined)
        pl.BlockSpec((Npad, Hp), lambda e: (0, 0)),    # x       (resident)
        pl.BlockSpec((NGp, Npad), lambda e: (0, 0)),   # bm      (resident)
        pl.BlockSpec((Npad, NGp), lambda e: (0, 0)),   # bt      (resident)
        pl.BlockSpec((F1p, Hp), lambda e: (0, 0)),     # wf1     (resident)
        pl.BlockSpec((4 * Hp, Hp), lambda e: (0, 0)),  # wconv   (resident)
        pl.BlockSpec((2 * Hp, Hp), lambda e: (0, 0)),  # wcat    (resident)
        pl.BlockSpec((8, Hp), lambda e: (0, 0)),       # biases / gamma / beta / mscale
    ]
    out_specs = pl.BlockSpec((Npad, Hp), lambda e: (0, 0))

    # VMEM working set: resident operands + output block + accumulators + 2x
    # (double-buffered) edge-tile operands.
    resident = sum(int(a.size) * a.dtype.itemsize
                   for a in (xp, bm, bt, wf1p, wconv, wcat, vec))
    resident += 3 * Npad * Hp * 4                       # out block + 2 accumulators
    per_step = (TE * F1p + TE * Hp + 2 * TE) * 4
    vmem_limit = _vmem_limit_bytes(resident + 2 * per_step)

    flops = 2 * (Epad * F1p * Hp + 3 * Epad * Npad * Hp
                 + 6 * Npad * Hp * Hp + 4 * Npad * NGp * Hp)
    bytes_accessed = sum(int(a.size) * a.dtype.itemsize for a in ins) + Npad * Hp * 4

    out = pl.pallas_call(
        interaction_kernel,
        out_shape=jax.ShapeDtypeStruct((Npad, Hp), jnp.float32),
        grid_spec=pltpu.PrefetchScalarGridSpec(
            num_scalar_prefetch=0,
            grid=(EB,),
            in_specs=in_specs,
            out_specs=out_specs,
            scratch_shapes=[pltpu.VMEM((Npad, Hp), jnp.float32),
                            pltpu.VMEM((Npad, Hp), jnp.float32)]),
        compiler_params=pltpu.CompilerParams(
            dimension_semantics=("arbitrary",),   # agg accumulates across edge tiles
            vmem_limit_bytes=vmem_limit),
        cost_estimate=pl.CostEstimate(flops=flops, transcendentals=NGp * Hp,
                                      bytes_accessed=bytes_accessed),
    )(*ins)
    return out[:N, :H]


# ----------------------- deterministic parameter init -----------------------
def _glorot(key, shape):
    fan_in, fan_out = shape[0], shape[-1]
    s = (6.0 / (fan_in + fan_out)) ** 0.5
    return jax.random.uniform(key, shape, jnp.float32, -s, s)


def init_params(key, H, M, F1, F2):
    ks = jax.random.split(key, 20)
    p = {
        # TwoLayerLinear (bias=False)
        "w1a": _glorot(ks[0], (F1, M)), "w1b": _glorot(ks[1], (M, H)),
        "w2a": _glorot(ks[2], (F2, M)), "w2b": _glorot(ks[3], (M, H)),
        # EdgeGraphConv: lin_l (bias), lin_r (no bias)
        "wl1": _glorot(ks[4], (H, H)), "bl1": jnp.zeros((1, H), jnp.float32),
        "wr1": _glorot(ks[5], (H, H)),
        "wl2": _glorot(ks[6], (H, H)), "bl2": jnp.zeros((1, H), jnp.float32),
        "wr2": _glorot(ks[7], (H, H)),
        # lin1 / lin2 (bias)
        "wlin1": _glorot(ks[8], (H, H)), "blin1": 0.01 * jax.random.normal(ks[9], (1, H)),
        "wlin2": _glorot(ks[10], (H, H)), "blin2": 0.01 * jax.random.normal(ks[11], (1, H)),
        # lin_cat: (2H -> H), split into h1-half and h2-half
        "wcat_a": _glorot(ks[12], (H, H)), "wcat_b": _glorot(ks[13], (H, H)),
        "bcat": 0.01 * jax.random.normal(ks[14], (1, H)),
        # GraphNorm defaults: weight=1, bias=0, mean_scale=1
        "gamma": jnp.ones((1, H), jnp.float32),
        "beta": jnp.zeros((1, H), jnp.float32),
        "mean_scale": jnp.ones((1, H), jnp.float32),
    }
    return p


# ----------------------------- pure-JAX reference ----------------------------
def reference(x, gate, f1_in, f2_in, edge_index, batch, p, num_graphs):
    src, dst = edge_index[0], edge_index[1]
    N = x.shape[0]
    f1 = _hdot(_hdot(f1_in, p["w1a"]), p["w1b"])
    f1 = f1 * gate
    xj = x[src]
    agg1 = jax.ops.segment_sum(f1 * xj, dst, num_segments=N)
    h1 = _hdot(agg1, p["wl1"]) + p["bl1"] + _hdot(x, p["wr1"])
    h1 = _hdot(h1, p["wlin1"]) + p["blin1"]
    h1 = jnp.where(h1 > 0, h1, LEAKY_SLOPE * h1)
    f2 = _hdot(_hdot(f2_in, p["w2a"]), p["w2b"])   # dead, matches the PyTorch code
    f2 = f1 * gate
    agg2 = jax.ops.segment_sum(f2 * xj, dst, num_segments=N)
    h2 = _hdot(agg2, p["wl2"]) + p["bl2"] + _hdot(x, p["wr2"])
    h2 = _hdot(h2, p["wlin2"]) + p["blin2"]
    h2 = jnp.where(h2 > 0, h2, LEAKY_SLOPE * h2)
    h = _hdot(h1, p["wcat_a"]) + _hdot(h2, p["wcat_b"]) + p["bcat"]
    counts = jax.ops.segment_sum(jnp.ones((N,), jnp.float32), batch, num_segments=num_graphs)
    mean_g = jax.ops.segment_sum(h, batch, num_segments=num_graphs) / counts[:, None]
    centered = h - mean_g[batch] * p["mean_scale"]
    var_g = jax.ops.segment_sum(centered * centered, batch, num_segments=num_graphs) / counts[:, None]
    std = jnp.sqrt(var_g + GN_EPS)[batch]
    return p["gamma"] * centered / std + p["beta"]


if __name__ == "__main__":
    # SimpleInteractionBlock(hidden_channels=32, middle_channels=16,
    #                        num_radial=4, num_spherical=3, ...)
    H, M = 32, 16
    num_radial, num_spherical = 4, 3
    F1 = num_radial * num_spherical ** 2   # 36
    F2 = num_radial * num_spherical        # 12
    N, E, NG = 16, 32, 2                   # nodes, edges, graphs in the batch

    key = jax.random.PRNGKey(0)
    k = jax.random.split(key, 8)
    x = jax.random.normal(k[0], (N, H), jnp.float32)
    gate_edge = jax.random.uniform(k[1], (E, H), jnp.float32)
    feature1 = jax.random.normal(k[2], (E, F1), jnp.float32)
    feature2 = jax.random.normal(k[3], (E, F2), jnp.float32)
    src = jax.random.randint(k[4], (E,), 0, N, jnp.int32)
    dst = jax.random.randint(k[5], (E,), 0, N, jnp.int32)
    edge_index = jnp.stack([src, dst])                          # [2, E]
    batch = jnp.concatenate([jnp.zeros(N // 2, jnp.int32),
                             jnp.ones(N - N // 2, jnp.int32)])  # [N]

    params = init_params(k[6], H, M, F1, F2)

    out = simple_interaction_block(x, gate_edge, feature1, feature2,
                                   edge_index, batch, params, NG)
    out = jax.block_until_ready(out)

    ref = reference(x, gate_edge, feature1, feature2, edge_index, batch, params, NG)
    assert out.shape == (N, H)
    # Precision policy: in-kernel matmuls run at the MXU's default precision
    # (bf16 passes, f32 accumulation) while the reference uses HIGHEST-precision
    # f32 matmuls; one-hot selectors, weight folds and GraphNorm algebra are
    # exact, so the tolerance only absorbs MXU-pass rounding / reassociation.
    assert jnp.allclose(out, ref, rtol=2e-2, atol=2e-2), "mismatch vs JAX reference"
    print("KERNEL_OK")
</pallas_src>

<mosaic_0001>
module attributes {stable_mosaic.version = 11 : i64} {
  func.func @interaction_kernel(%arg0: i32, %arg1: memref<128x128xf32, #tpu.memory_space<vmem>>, %arg2: memref<128x128xf32, #tpu.memory_space<vmem>>, %arg3: memref<128x1xi32, #tpu.memory_space<vmem>>, %arg4: memref<1x128xi32, #tpu.memory_space<vmem>>, %arg5: memref<16x128xf32, #tpu.memory_space<vmem>>, %arg6: memref<8x16xf32, #tpu.memory_space<vmem>>, %arg7: memref<16x8xf32, #tpu.memory_space<vmem>>, %arg8: memref<128x128xf32, #tpu.memory_space<vmem>>, %arg9: memref<512x128xf32, #tpu.memory_space<vmem>>, %arg10: memref<256x128xf32, #tpu.memory_space<vmem>>, %arg11: memref<8x128xf32, #tpu.memory_space<vmem>>, %arg12: memref<16x128xf32, #tpu.memory_space<vmem>>, %arg13: memref<16x128xf32, #tpu.memory_space<vmem>>, %arg14: memref<16x128xf32, #tpu.memory_space<vmem>>) attributes {dimension_semantics = [#tpu.dimension_semantics<arbitrary>], iteration_bounds = array<i64: 1>, scalar_prefetch = 0 : i64, scratch_operands = 2 : i64, tpu.core_type = #tpu.core_type<tc>, window_params = [{transform_indices = @transform_0, window_bounds = array<i64: 128, 128>}, {transform_indices = @transform_1, window_bounds = array<i64: 128, 128>}, {transform_indices = @transform_2, window_bounds = array<i64: 128, 1>}, {transform_indices = @transform_3, window_bounds = array<i64: 1, 128>}, {pipeline_mode = #tpu.pipeline_mode<synchronous>, transform_indices = @transform_4, window_bounds = array<i64: 16, 128>}, {pipeline_mode = #tpu.pipeline_mode<synchronous>, transform_indices = @transform_5, window_bounds = array<i64: 8, 16>}, {pipeline_mode = #tpu.pipeline_mode<synchronous>, transform_indices = @transform_6, window_bounds = array<i64: 16, 8>}, {pipeline_mode = #tpu.pipeline_mode<synchronous>, transform_indices = @transform_7, window_bounds = array<i64: 128, 128>}, {pipeline_mode = #tpu.pipeline_mode<synchronous>, transform_indices = @transform_8, window_bounds = array<i64: 512, 128>}, {pipeline_mode = #tpu.pipeline_mode<synchronous>, transform_indices = @transform_9, window_bounds = array<i64: 256, 128>}, {pipeline_mode = #tpu.pipeline_mode<synchronous>, transform_indices = @transform_10, window_bounds = array<i64: 8, 128>}, {pipeline_mode = #tpu.pipeline_mode<synchronous>, transform_indices = @transform_11, window_bounds = array<i64: 16, 128>}]} {
    %c0_i32 = arith.constant 0 : i32
    %0 = arith.cmpi eq, %arg0, %c0_i32 : i32
    %1 = arith.extui %0 : i1 to i32
    %c0_i32_0 = arith.constant 0 : i32
    %2 = arith.cmpi ne, %1, %c0_i32_0 : i32
    scf.if %2 {
      %cst_29 = arith.constant 0.000000e+00 : f32
      %37 = vector.broadcast %cst_29 : f32 to vector<16x128xf32>
      %c0_30 = arith.constant 0 : index
      %c0_31 = arith.constant 0 : index
      %38 = vector.load %arg13[%c0_30, %c0_31] : memref<16x128xf32, #tpu.memory_space<vmem>>, vector<16x128xf32>
      tpu.vector_store %arg13[%c0_30, %c0_31], %37 {strides = array<i32>} : memref<16x128xf32, #tpu.memory_space<vmem>>, vector<16x128xf32>,
      %cst_32 = arith.constant 0.000000e+00 : f32
      %39 = vector.broadcast %cst_32 : f32 to vector<16x128xf32>
      %c0_33 = arith.constant 0 : index
      %c0_34 = arith.constant 0 : index
      %40 = vector.load %arg14[%c0_33, %c0_34] : memref<16x128xf32, #tpu.memory_space<vmem>>, vector<16x128xf32>
      tpu.vector_store %arg14[%c0_33, %c0_34], %39 {strides = array<i32>} : memref<16x128xf32, #tpu.memory_space<vmem>>, vector<16x128xf32>,
    } else {
    }
    %c0 = arith.constant 0 : index
    %c0_1 = arith.constant 0 : index
    %3 = vector.load %arg2[%c0, %c0_1] : memref<128x128xf32, #tpu.memory_space<vmem>>, vector<128x128xf32>
    %c0_2 = arith.constant 0 : index
    %c0_3 = arith.constant 0 : index
    %4 = vector.load %arg1[%c0_2, %c0_3] : memref<128x128xf32, #tpu.memory_space<vmem>>, vector<128x128xf32>
    %c0_4 = arith.constant 0 : index
    %c0_5 = arith.constant 0 : index
    %5 = vector.load %arg8[%c0_4, %c0_5] : memref<128x128xf32, #tpu.memory_space<vmem>>, vector<128x128xf32>
    %cst = arith.constant dense<0.000000e+00> : vector<128x128xf32>
    %6 = tpu.matmul %4, %5, %cst {dimension_numbers = #tpu.dot_dimension_numbers<[1], [0], [0], [1], [0, 0, 1, 1], [], []>} : vector<128x128xf32>, vector<128x128xf32>, vector<128x128xf32> -> vector<128x128xf32>
    %7 = arith.mulf %6, %3 : vector<128x128xf32>
    %c0_6 = arith.constant 0 : index
    %c0_7 = arith.constant 0 : index
    %8 = vector.load %arg3[%c0_6, %c0_7] : memref<128x1xi32, #tpu.memory_space<vmem>>, vector<128x1xi32>
    %9 = tpu.iota {dimensions = array<i32: 1>} : vector<128x16xi32>
    %10 = vector.broadcast %8 : vector<128x1xi32> to vector<128x16xi32>
    %11 = arith.cmpi eq, %10, %9 : vector<128x16xi32>
    %cst_8 = arith.constant 1.000000e+00 : f32
    %cst_9 = arith.constant 0.000000e+00 : f32
    %12 = vector.broadcast %cst_8 : f32 to vector<128x16xf32>
    %13 = vector.broadcast %cst_9 : f32 to vector<128x16xf32>
    %14 = arith.select %11, %12, %13 : vector<128x16xi1>, vector<128x16xf32>
    %c0_10 = arith.constant 0 : index
    %c0_11 = arith.constant 0 : index
    %15 = vector.load %arg5[%c0_10, %c0_11] : memref<16x128xf32, #tpu.memory_space<vmem>>, vector<16x128xf32>
    %cst_12 = arith.constant dense<0.000000e+00> : vector<128x128xf32>
    %16 = tpu.matmul %14, %15, %cst_12 {dimension_numbers = #tpu.dot_dimension_numbers<[1], [0], [0], [1], [0, 0, 1, 1], [], []>} : vector<128x16xf32>, vector<16x128xf32>, vector<128x128xf32> -> vector<128x128xf32>
    %17 = arith.mulf %7, %16 : vector<128x128xf32>
    %c0_13 = arith.constant 0 : index
    %c0_14 = arith.constant 0 : index
    %18 = vector.load %arg4[%c0_13, %c0_14] : memref<1x128xi32, #tpu.memory_space<vmem>>, vector<1x128xi32>
    %19 = tpu.iota {dimensions = array<i32: 0>} : vector<16x128xi32>
    %20 = vector.broadcast %18 : vector<1x128xi32> to vector<16x128xi32>
    %21 = arith.cmpi eq, %19, %20 : vector<16x128xi32>
    %cst_15 = arith.constant 1.000000e+00 : f32
    %cst_16 = arith.constant 0.000000e+00 : f32
    %22 = vector.broadcast %cst_15 : f32 to vector<16x128xf32>
    %23 = vector.broadcast %cst_16 : f32 to vector<16x128xf32>
    %24 = arith.select %21, %22, %23 : vector<16x128xi1>, vector<16x128xf32>
    %c0_17 = arith.constant 0 : index
    %c0_18 = arith.constant 0 : index
    %25 = vector.load %arg13[%c0_17, %c0_18] : memref<16x128xf32, #tpu.memory_space<vmem>>, vector<16x128xf32>
    %cst_19 = arith.constant dense<0.000000e+00> : vector<16x128xf32>
    %26 = tpu.matmul %24, %17, %cst_19 {dimension_numbers = #tpu.dot_dimension_numbers<[1], [0], [0], [1], [0, 0, 1, 1], [], []>} : vector<16x128xf32>, vector<128x128xf32>, vector<16x128xf32> -> vector<16x128xf32>
    %27 = arith.addf %25, %26 : vector<16x128xf32>
    %c0_20 = arith.constant 0 : index
    %c0_21 = arith.constant 0 : index
    %28 = vector.load %arg13[%c0_20, %c0_21] : memref<16x128xf32, #tpu.memory_space<vmem>>, vector<16x128xf32>
    tpu.vector_store %arg13[%c0_20, %c0_21], %27 {strides = array<i32>} : memref<16x128xf32, #tpu.memory_space<vmem>>, vector<16x128xf32>,
    %c0_22 = arith.constant 0 : index
    %c0_23 = arith.constant 0 : index
    %29 = vector.load %arg14[%c0_22, %c0_23] : memref<16x128xf32, #tpu.memory_space<vmem>>, vector<16x128xf32>
    %30 = arith.mulf %17, %3 : vector<128x128xf32>
    %cst_24 = arith.constant dense<0.000000e+00> : vector<16x128xf32>
    %31 = tpu.matmul %24, %30, %cst_24 {dimension_numbers = #tpu.dot_dimension_numbers<[1], [0], [0], [1], [0, 0, 1, 1], [], []>} : vector<16x128xf32>, vector<128x128xf32>, vector<16x128xf32> -> vector<16x128xf32>
    %32 = arith.addf %29, %31 : vector<16x128xf32>
    %c0_25 = arith.constant 0 : index
    %c0_26 = arith.constant 0 : index
    %33 = vector.load %arg14[%c0_25, %c0_26] : memref<16x128xf32, #tpu.memory_space<vmem>>, vector<16x128xf32>
    tpu.vector_store %arg14[%c0_25, %c0_26], %32 {strides = array<i32>} : memref<16x128xf32, #tpu.memory_space<vmem>>, vector<16x128xf32>,
    %c0_i32_27 = arith.constant 0 : i32
    %34 = arith.cmpi eq, %arg0, %c0_i32_27 : i32
    %35 = arith.extui %34 : i1 to i32
    %c0_i32_28 = arith.constant 0 : i32
    %36 = arith.cmpi ne, %35, %c0_i32_28 : i32
    scf.if %36 {
      %c0_29 = arith.constant 0 : index
      %c0_30 = arith.constant 0 : index
      %37 = vector.load %arg5[%c0_29, %c0_30] : memref<16x128xf32, #tpu.memory_space<vmem>>, vector<16x128xf32>
      %c0_31 = arith.constant 0 : index
      %c0_32 = arith.constant 0 : index
      %38 = vector.load %arg9[%c0_31, %c0_32] : memref<512x128xf32, #tpu.memory_space<vmem>>, vector<128x128xf32>
      %c128 = arith.constant 128 : index
      %c0_33 = arith.constant 0 : index
      %39 = vector.load %arg9[%c128, %c0_33] : memref<512x128xf32, #tpu.memory_space<vmem>>, vector<128x128xf32>
      %c256 = arith.constant 256 : index
      %c0_34 = arith.constant 0 : index
      %40 = vector.load %arg9[%c256, %c0_34] : memref<512x128xf32, #tpu.memory_space<vmem>>, vector<128x128xf32>
      %c384 = arith.constant 384 : index
      %c0_35 = arith.constant 0 : index
      %41 = vector.load %arg9[%c384, %c0_35] : memref<512x128xf32, #tpu.memory_space<vmem>>, vector<128x128xf32>
      %c0_36 = arith.constant 0 : index
      %c0_37 = arith.constant 0 : index
      %42 = vector.load %arg11[%c0_36, %c0_37] : memref<8x128xf32, #tpu.memory_space<vmem>>, vector<1x128xf32>
      %c1 = arith.constant 1 : index
      %c0_38 = arith.constant 0 : index
      %43 = vector.load %arg11[%c1, %c0_38] : memref<8x128xf32, #tpu.memory_space<vmem>>, vector<1x128xf32>
      %c2 = arith.constant 2 : index
      %c0_39 = arith.constant 0 : index
      %44 = vector.load %arg11[%c2, %c0_39] : memref<8x128xf32, #tpu.memory_space<vmem>>, vector<1x128xf32>
      %c3 = arith.constant 3 : index
      %c0_40 = arith.constant 0 : index
      %45 = vector.load %arg11[%c3, %c0_40] : memref<8x128xf32, #tpu.memory_space<vmem>>, vector<1x128xf32>
      %c4 = arith.constant 4 : index
      %c0_41 = arith.constant 0 : index
      %46 = vector.load %arg11[%c4, %c0_41] : memref<8x128xf32, #tpu.memory_space<vmem>>, vector<1x128xf32>
      %c5 = arith.constant 5 : index
      %c0_42 = arith.constant 0 : index
      %47 = vector.load %arg11[%c5, %c0_42] : memref<8x128xf32, #tpu.memory_space<vmem>>, vector<1x128xf32>
      %c0_43 = arith.constant 0 : index
      %c0_44 = arith.constant 0 : index
      %48 = vector.load %arg13[%c0_43, %c0_44] : memref<16x128xf32, #tpu.memory_space<vmem>>, vector<16x128xf32>
      %cst_45 = arith.constant dense<0.000000e+00> : vector<16x128xf32>
      %49 = tpu.matmul %48, %38, %cst_45 {dimension_numbers = #tpu.dot_dimension_numbers<[1], [0], [0], [1], [0, 0, 1, 1], [], []>} : vector<16x128xf32>, vector<128x128xf32>, vector<16x128xf32> -> vector<16x128xf32>
      %cst_46 = arith.constant dense<0.000000e+00> : vector<16x128xf32>
      %50 = tpu.matmul %37, %39, %cst_46 {dimension_numbers = #tpu.dot_dimension_numbers<[1], [0], [0], [1], [0, 0, 1, 1], [], []>} : vector<16x128xf32>, vector<128x128xf32>, vector<16x128xf32> -> vector<16x128xf32>
      %51 = arith.addf %49, %50 : vector<16x128xf32>
      %52 = vector.broadcast %42 : vector<1x128xf32> to vector<16x128xf32>
      %53 = arith.addf %51, %52 : vector<16x128xf32>
      %cst_47 = arith.constant 0.000000e+00 : f32
      %54 = vector.broadcast %cst_47 : f32 to vector<16x128xf32>
      %55 = arith.cmpf ogt, %53, %54 : vector<16x128xf32>
      %cst_48 = arith.constant 1.000000e-01 : f32
      %56 = vector.broadcast %cst_48 : f32 to vector<16x128xf32>
      %57 = arith.mulf %56, %53 : vector<16x128xf32>
      %58 = arith.select %55, %53, %57 : vector<16x128xi1>, vector<16x128xf32>
      %c0_49 = arith.constant 0 : index
      %c0_50 = arith.constant 0 : index
      %59 = vector.load %arg14[%c0_49, %c0_50] : memref<16x128xf32, #tpu.memory_space<vmem>>, vector<16x128xf32>
      %cst_51 = arith.constant dense<0.000000e+00> : vector<16x128xf32>
      %60 = tpu.matmul %59, %40, %cst_51 {dimension_numbers = #tpu.dot_dimension_numbers<[1], [0], [0], [1], [0, 0, 1, 1], [], []>} : vector<16x128xf32>, vector<128x128xf32>, vector<16x128xf32> -> vector<16x128xf32>
      %cst_52 = arith.constant dense<0.000000e+00> : vector<16x128xf32>
      %61 = tpu.matmul %37, %41, %cst_52 {dimension_numbers = #tpu.dot_dimension_numbers<[1], [0], [0], [1], [0, 0, 1, 1], [], []>} : vector<16x128xf32>, vector<128x128xf32>, vector<16x128xf32> -> vector<16x128xf32>
      %62 = arith.addf %60, %61 : vector<16x128xf32>
      %63 = vector.broadcast %43 : vector<1x128xf32> to vector<16x128xf32>
      %64 = arith.addf %62, %63 : vector<16x128xf32>
      %cst_53 = arith.constant 0.000000e+00 : f32
      %65 = vector.broadcast %cst_53 : f32 to vector<16x128xf32>
      %66 = arith.cmpf ogt, %64, %65 : vector<16x128xf32>
      %cst_54 = arith.constant 1.000000e-01 : f32
      %67 = vector.broadcast %cst_54 : f32 to vector<16x128xf32>
      %68 = arith.mulf %67, %64 : vector<16x128xf32>
      %69 = arith.select %66, %64, %68 : vector<16x128xi1>, vector<16x128xf32>
      %c0_55 = arith.constant 0 : index
      %c0_56 = arith.constant 0 : index
      %70 = vector.load %arg10[%c0_55, %c0_56] : memref<256x128xf32, #tpu.memory_space<vmem>>, vector<128x128xf32>
      %cst_57 = arith.constant dense<0.000000e+00> : vector<16x128xf32>
      %71 = tpu.matmul %58, %70, %cst_57 {dimension_numbers = #tpu.dot_dimension_numbers<[1], [0], [0], [1], [0, 0, 1, 1], [], []>} : vector<16x128xf32>, vector<128x128xf32>, vector<16x128xf32> -> vector<16x128xf32>
      %c128_58 = arith.constant 128 : index
      %c0_59 = arith.constant 0 : index
      %72 = vector.load %arg10[%c128_58, %c0_59] : memref<256x128xf32, #tpu.memory_space<vmem>>, vector<128x128xf32>
      %cst_60 = arith.constant dense<0.000000e+00> : vector<16x128xf32>
      %73 = tpu.matmul %69, %72, %cst_60 {dimension_numbers = #tpu.dot_dimension_numbers<[1], [0], [0], [1], [0, 0, 1, 1], [], []>} : vector<16x128xf32>, vector<128x128xf32>, vector<16x128xf32> -> vector<16x128xf32>
      %74 = arith.addf %71, %73 : vector<16x128xf32>
      %75 = vector.broadcast %44 : vector<1x128xf32> to vector<16x128xf32>
      %76 = arith.addf %74, %75 : vector<16x128xf32>
      %c0_61 = arith.constant 0 : index
      %c0_62 = arith.constant 0 : index
      %77 = vector.load %arg6[%c0_61, %c0_62] : memref<8x16xf32, #tpu.memory_space<vmem>>, vector<8x16xf32>
      %c0_63 = arith.constant 0 : index
      %c0_64 = arith.constant 0 : index
      %78 = vector.load %arg7[%c0_63, %c0_64] : memref<16x8xf32, #tpu.memory_space<vmem>>, vector<16x8xf32>
      %cst_65 = arith.constant dense<0.000000e+00> : vector<8x128xf32>
      %79 = tpu.matmul %77, %76, %cst_65 {dimension_numbers = #tpu.dot_dimension_numbers<[1], [0], [0], [1], [0, 0, 1, 1], [], []>} : vector<8x16xf32>, vector<16x128xf32>, vector<8x128xf32> -> vector<8x128xf32>
      %cst_66 = arith.constant dense<0.000000e+00> : vector<16x128xf32>
      %80 = tpu.matmul %78, %79, %cst_66 {dimension_numbers = #tpu.dot_dimension_numbers<[1], [0], [0], [1], [0, 0, 1, 1], [], []>} : vector<16x8xf32>, vector<8x128xf32>, vector<16x128xf32> -> vector<16x128xf32>
      %81 = vector.broadcast %47 : vector<1x128xf32> to vector<16x128xf32>
      %82 = arith.mulf %80, %81 : vector<16x128xf32>
      %83 = arith.subf %76, %82 : vector<16x128xf32>
      %84 = arith.mulf %83, %83 : vector<16x128xf32>
      %cst_67 = arith.constant dense<0.000000e+00> : vector<8x128xf32>
      %85 = tpu.matmul %77, %84, %cst_67 {dimension_numbers = #tpu.dot_dimension_numbers<[1], [0], [0], [1], [0, 0, 1, 1], [], []>} : vector<8x16xf32>, vector<16x128xf32>, vector<8x128xf32> -> vector<8x128xf32>
      %cst_68 = arith.constant 9.99999974E-6 : f32
      %86 = vector.broadcast %cst_68 : f32 to vector<8x128xf32>
      %87 = arith.addf %85, %86 : vector<8x128xf32>
      %88 = math.rsqrt %87 : vector<8x128xf32>
      %89 = vector.broadcast %45 : vector<1x128xf32> to vector<8x128xf32>
      %90 = arith.mulf %88, %89 : vector<8x128xf32>
      %cst_69 = arith.constant dense<0.000000e+00> : vector<16x128xf32>
      %91 = tpu.matmul %78, %90, %cst_69 {dimension_numbers = #tpu.dot_dimension_numbers<[1], [0], [0], [1], [0, 0, 1, 1], [], []>} : vector<16x8xf32>, vector<8x128xf32>, vector<16x128xf32> -> vector<16x128xf32>
      %92 = arith.mulf %83, %91 : vector<16x128xf32>
      %93 = vector.broadcast %46 : vector<1x128xf32> to vector<16x128xf32>
      %94 = arith.addf %92, %93 : vector<16x128xf32>
      %c0_70 = arith.constant 0 : index
      %c0_71 = arith.constant 0 : index
      %95 = vector.load %arg12[%c0_70, %c0_71] : memref<16x128xf32, #tpu.memory_space<vmem>>, vector<16x128xf32>
      tpu.vector_store %arg12[%c0_70, %c0_71], %94 {strides = array<i32>} : memref<16x128xf32, #tpu.memory_space<vmem>>, vector<16x128xf32>,
    } else {
    }
    return
  }
  func.func @transform_0(%arg0: i32) -> (i32, i32) {
    %c0_i32 = arith.constant 0 : i32
    %c0_i32_0 = arith.constant 0 : i32
    return %arg0, %c0_i32 : i32, i32
  }
  func.func @transform_1(%arg0: i32) -> (i32, i32) {
    %c0_i32 = arith.constant 0 : i32
    %c0_i32_0 = arith.constant 0 : i32
    return %arg0, %c0_i32 : i32, i32
  }
  func.func @transform_2(%arg0: i32) -> (i32, i32) {
    %c0_i32 = arith.constant 0 : i32
    %c0_i32_0 = arith.constant 0 : i32
    return %arg0, %c0_i32 : i32, i32
  }
  func.func @transform_3(%arg0: i32) -> (i32, i32) {
    %c0_i32 = arith.constant 0 : i32
    %c0_i32_0 = arith.constant 0 : i32
    return %c0_i32, %arg0 : i32, i32
  }
  func.func @transform_4(%arg0: i32) -> (i32, i32) {
    %c0_i32 = arith.constant 0 : i32
    %c0_i32_0 = arith.constant 0 : i32
    %c0_i32_1 = arith.constant 0 : i32
    return %c0_i32, %c0_i32_0 : i32, i32
  }
  func.func @transform_5(%arg0: i32) -> (i32, i32) {
    %c0_i32 = arith.constant 0 : i32
    %c0_i32_0 = arith.constant 0 : i32
    %c0_i32_1 = arith.constant 0 : i32
    return %c0_i32, %c0_i32_0 : i32, i32
  }
  func.func @transform_6(%arg0: i32) -> (i32, i32) {
    %c0_i32 = arith.constant 0 : i32
    %c0_i32_0 = arith.constant 0 : i32
    %c0_i32_1 = arith.constant 0 : i32
    return %c0_i32, %c0_i32_0 : i32, i32
  }
  func.func @transform_7(%arg0: i32) -> (i32, i32) {
    %c0_i32 = arith.constant 0 : i32
    %c0_i32_0 = arith.constant 0 : i32
    %c0_i32_1 = arith.constant 0 : i32
    return %c0_i32, %c0_i32_0 : i32, i32
  }
  func.func @transform_8(%arg0: i32) -> (i32, i32) {
    %c0_i32 = arith.constant 0 : i32
    %c0_i32_0 = arith.constant 0 : i32
    %c0_i32_1 = arith.constant 0 : i32
    return %c0_i32, %c0_i32_0 : i32, i32
  }
  func.func @transform_9(%arg0: i32) -> (i32, i32) {
    %c0_i32 = arith.constant 0 : i32
    %c0_i32_0 = arith.constant 0 : i32
    %c0_i32_1 = arith.constant 0 : i32
    return %c0_i32, %c0_i32_0 : i32, i32
  }
  func.func @transform_10(%arg0: i32) -> (i32, i32) {
    %c0_i32 = arith.constant 0 : i32
    %c0_i32_0 = arith.constant 0 : i32
    %c0_i32_1 = arith.constant 0 : i32
    return %c0_i32, %c0_i32_0 : i32, i32
  }
  func.func @transform_11(%arg0: i32) -> (i32, i32) {
    %c0_i32 = arith.constant 0 : i32
    %c0_i32_0 = arith.constant 0 : i32
    %c0_i32_1 = arith.constant 0 : i32
    return %c0_i32, %c0_i32_0 : i32, i32
  }
}

</mosaic_0001>

<bundles_post_ra>
// kernel: tpu_custom_call.1
= control target key start
LH: loop header
LB: loop body
LE: loop exit
PB: predicated region body
PF: predicated region fallthrough
CT: control target
= control target key end

     0   :  { %16 = vsyncpa [#allocation5], 0  ;;  %s1559_s0 = inlined_call_operand.vmem [shape: f32[128,128], index: 0, kind: input, shape index: {}]   ;;  %s1560_s1 = inlined_call_operand.hbm [shape: f32[128,128], index: 1, kind: input, shape index: {}]   ;;  %s1561_s2 = inlined_call_operand.vmem [shape: s32[128,1], index: 2, kind: input, shape index: {}]   ;;  %s1562_s3 = inlined_call_operand.hbm [shape: s32[1,128], index: 3, kind: input, shape index: {}]   ;;  %s1563_s4 = inlined_call_operand.vmem [shape: f32[16,128], index: 4, kind: input, shape index: {}]   ;;  %s1564_s5 = inlined_call_operand.vmem [shape: f32[8,16], index: 5, kind: input, shape index: {}]   ;;  %s1565_s6 = inlined_call_operand.vmem [shape: f32[16,8], index: 6, kind: input, shape index: {}]   ;;  %s1566_s7 = inlined_call_operand.hbm [shape: f32[128,128], index: 7, kind: input, shape index: {}]   ;;  %s1567_s8 = inlined_call_operand.hbm [shape: f32[512,128], index: 8, kind: input, shape index: {}]   ;;  %s1568_s9 = inlined_call_operand.hbm [shape: f32[256,128], index: 9, kind: input, shape index: {}]   ;;  %s1569_s10 = inlined_call_operand.vmem [shape: f32[8,128], index: 10, kind: input, shape index: {}]   ;;  %s1570_s11 = inlined_call_operand.hbm [shape: f32[16,128], index: 11, kind: output, shape index: {}]  }
   0x1   :  { %17 = vsyncpa [#allocation8], 0 }
   0x2   :  { %18 = vsyncpa [#allocation11], 0  ;;  %s42_s19 = sshll.u32 %s1562_s3, 4  ;;  %s43_s19 = int_to_ptr.hbm [resolvable:$true] %s42_s19 }
   0x3   :  { %19 = vsyncpa [#allocation6], 0  ;;  %s1182_s20 = smov [#allocation7]   ;;  %s71_s24 = sshll.u32 %s1567_s8, 4  ;;  %s72_s24 = int_to_ptr.hbm [resolvable:$true] %s71_s24 }
   0x4   :  { %s44_s21 = sshll.u32 %s1182_s20, 4  ;;  %s1183_s25 = smov [#allocation10]   ;;  %s45_s21 = int_to_ptr.vmem [resolvable:$true] %s44_s21 }
   0x5   :  { %47 = dma.hbm_to_vmem [thread:$0]  %s43_s19, 16, %s45_s21, [#allocation8]  }
   0x6   :  { %s73_s26 = sshll.u32 %s1183_s25, 4  ;;  %s26_s29 = sshll.u32 %s1560_s1, 4  ;;  %s74_s26 = int_to_ptr.vmem [resolvable:$true] %s73_s26  ;;  %s27_s29 = int_to_ptr.hbm [resolvable:$true] %s26_s29 }
   0x7   :  { %s1184_s3 = smov 128   ;;  %s1185_s30 = smov 8  }
   0x8   :  { %79 = dma.hbm_to_vmem [thread:$0]  %s72_s24, 8192, %s74_s26, [#allocation11], %s1184_s3, %s1184_s3, %s1185_s30  }
   0x9   :  { %s58_s14 = sshll.u32 %s1566_s7, 4  ;;  %s1186_s8 = smov [#allocation4]   ;;  %s59_s14 = int_to_ptr.hbm [resolvable:$true] %s58_s14 }
   0xa   :  { %s28_s15 = sshll.u32 %s1186_s8, 4  ;;  %s1187_s1 = smov [#allocation9]   ;;  %s29_s15 = int_to_ptr.vmem [resolvable:$true] %s28_s15 }
   0xb   :  { %34 = dma.hbm_to_vmem [thread:$0]  %s27_s29, 2048, %s29_s15, [#allocation5], %s1184_s3, %s1184_s3, %s1185_s30  }
   0xc   :  { %s60_s16 = sshll.u32 %s1187_s1, 4  ;;  %s84_s19 = sshll.u32 %s1568_s9, 4  ;;  %s61_s16 = int_to_ptr.vmem [resolvable:$true] %s60_s16  ;;  %s85_s19 = int_to_ptr.hbm [resolvable:$true] %s84_s19 }
   0xd   :  { %66 = dma.hbm_to_vmem [thread:$0]  %s59_s14, 2048, %s61_s16, [#allocation8], %s1184_s3, %s1184_s3, %s1185_s30  }
   0xe   :  { %s1188_s7 = smov [#allocation12]  }
   0xf   :  { %s86_s20 = sshll.u32 %s1188_s7, 4  ;;  %s87_s20 = int_to_ptr.vmem [resolvable:$true] %s86_s20 }
  0x10   :  { %92 = dma.hbm_to_vmem [thread:$0]  %s85_s19, 4096, %s87_s20, [#allocation11], %s1184_s3, %s1184_s3, %s1185_s30  }
  0x11   :  { %1174 = dma.done.wait [#allocation5], 2048  }
  0x12   :  { %1175 = vsyncadd [#allocation5], 4294965248 }
  0x13   :  { %1176 = dma.done.wait [#allocation8], 2064  }
  0x14   :  { %1177 = vsyncadd [#allocation8], 4294965232 }
  0x15   :  { %1178 = dma.done.wait [#allocation11], 12288  }
  0x16   :  { %1179 = vsyncadd [#allocation11], 4294955008  ;;  %v1189_v0 = vmov 0   ;;  %v254_v1 = vld [vmem:[%s1561_s2 + $0x10] sm:$0xff]  ;;  %v252_v2 = vld [vmem:[%s1561_s2] sm:$0xff]  ;;  %v268_v40 = vlaneseq  ;;  %v1190_v44 = vmov 0.0  }
  0x17   :  { %1019 = vset.pattern.permute.xlu1 %v1189_v0  ;;  %1018 = vset.pattern.permute.xlu0 %v1189_v0  ;;  %v256_v3 = vld [vmem:[%s1561_s2 + $0x20] sm:$0xff]  ;;  %v255_v4 = vld [vmem:[%s1561_s2 + $0x18] sm:$0xff]  ;;  %v253_v5 = vld [vmem:[%s1561_s2 + $0x8] sm:$0xff]  ;;  %vm352_vm1 = vcmask 130048   ;;  %s1192_s8 = smov [#allocation13]   ;;  %s966_s17 = sshll.u32 %s1570_s11, 4  ;;  %s967_s17 = int_to_ptr.hbm [resolvable:$true] %s966_s17 }
  0x18   :  { %1020 = vset.pattern.permute.xlu2 %v1189_v0  ;;  %277 = vperm.xlu1 %1019, %v254_v1   ;;  %v257_v6 = vld [vmem:[%s1561_s2 + $0x28] sm:$0xff]  ;;  %v170_v7 = vld [vmem:[#allocation9 + $0x78] sm:$0xff]  ;;  %v169_v8 = vld [vmem:[#allocation9 + $0x70] sm:$0xff]  ;;  %v1355_v42 = vand.u32 127, %v268_v40  ;;  %s964_s15 = sshll.u32 %s1192_s8, 4  ;;  %s965_s15 = int_to_ptr.vmem [resolvable:$true] %s964_s15 }
  0x19   :  { %271 = vperm.xlu0 %1018, %v252_v2   ;;  %283 = vperm.xlu2 %1020, %v256_v3   ;;  %v168_v9 = vld [vmem:[#allocation9 + $0x68] sm:$0xff]  ;;  %v167_v10 = vld [vmem:[#allocation9 + $0x60] sm:$0xff]  ;;  %v259_v11 = vld [vmem:[%s1561_s2 + $0x38] sm:$0xff] }
  0x1a   :  { %171 = vmatpush.msra.mxu0 %v170_v7  ;;  %v258_v12 = vld [vmem:[%s1561_s2 + $0x30] sm:$0xff]  ;;  %v1307_v13 = vld [vmem:[%s1563_s4 + $0x8] sm:$0xff]  ;;  %v166_v14 = vld [vmem:[#allocation9 + $0x58] sm:$0xff] }
  0x1b   :  { %415 = vmatpush.msra.mxu1 %v1307_v13  ;;  %v260_v15 = vld [vmem:[%s1561_s2 + $0x40] sm:$0xff]  ;;  %v165_v16 = vld [vmem:[#allocation9 + $0x50] sm:$0xff]  ;;  %v164_v17 = vld [vmem:[#allocation9 + $0x48] sm:$0xff] }
  0x1c   :  { %172 = vmatpush.msra.mxu0 %v169_v8  ;;  %v163_v18 = vld [vmem:[#allocation9 + $0x40] sm:$0xff]  ;;  %v262_v19 = vld [vmem:[%s1561_s2 + $0x50] sm:$0xff]  ;;  %v162_v21 = vld [vmem:[#allocation9 + $0x38] sm:$0xff] }
  0x1d   :  { %v261_v20 = vld [vmem:[%s1561_s2 + $0x48] sm:$0xff]  ;;  %v263_v22 = vld [vmem:[%s1561_s2 + $0x58] sm:$0xff]  ;;  %v264_v27 = vld [vmem:[%s1561_s2 + $0x60] sm:$0xff] }
  0x1e   :  { %173 = vmatpush.msra.mxu0 %v168_v9  ;;  %v161_v23 = vld [vmem:[#allocation9 + $0x30] sm:$0xff]  ;;  %v160_v24 = vld [vmem:[#allocation9 + $0x28] sm:$0xff]  ;;  %v159_v25 = vld [vmem:[#allocation9 + $0x20] sm:$0xff] }
  0x1f   :  { %v265_v26 = vld [vmem:[%s1561_s2 + $0x68] sm:$0xff]  ;;  %v158_v28 = vld [vmem:[#allocation9 + $0x18] sm:$0xff]  ;;  %v266_v29 = vld [vmem:[%s1561_s2 + $0x70] sm:$0xff] }
  0x20   :  { %280 = vperm.xlu1 %1019, %v255_v4   ;;  %174 = vmatpush.msra.mxu0 %v167_v10  ;;  %v157_v30 = vld [vmem:[#allocation9 + $0x10] sm:$0xff]  ;;  %v156_v31 = vld [vmem:[#allocation9 + $0x8] sm:$0xff]  ;;  %v155_v33 = vld [vmem:[#allocation9] sm:$0xff] }
  0x21   :  { %274 = vperm.xlu0 %1018, %v253_v5   ;;  %286 = vperm.xlu2 %1020, %v257_v6   ;;  %v267_v32 = vld [vmem:[%s1561_s2 + $0x78] sm:$0xff]  ;;  %v139_v34 = vld [vmem:[%s1559_s0] sm:$0xff]  ;;  %v140_v36 = vld [vmem:[%s1559_s0 + $0x8] sm:$0xff] }
  0x22   :  { %175 = vmatpush.msra.mxu0 %v166_v14  ;;  %v1340_v35 = vld [vmem:[%s1563_s4] sm:$0xff]  ;;  %v141_v38 = vld [vmem:[%s1559_s0 + $0x10] sm:$0xff]  ;;  %v142_v41 = vld [vmem:[%s1559_s0 + $0x18] sm:$0xff] }
  0x23   :  { %416 = vmatpush.msra.mxu1 %v1340_v35  ;;  %v143_v48 = vld [vmem:[%s1559_s0 + $0x20] sm:$0xff]  ;;  %v144_v54 = vld [vmem:[%s1559_s0 + $0x28] sm:$0xff]  ;;  %v145_v58 = vld [vmem:[%s1559_s0 + $0x30] sm:$0xff] }
  0x24   :  { %176 = vmatpush.msra.mxu0 %v165_v16  ;;  %v146_v62 = vld [vmem:[%s1559_s0 + $0x38] sm:$0xff]  ;;  %v147_v4 = vld [vmem:[%s1559_s0 + $0x40] sm:$0xff]  ;;  %v148_v10 = vld [vmem:[%s1559_s0 + $0x48] sm:$0xff] }
  0x26   :  { %177 = vmatpush.msra.mxu0 %v164_v17  ;;  %v150_v17 = vld [vmem:[%s1559_s0 + $0x58] sm:$0xff] }
  0x28   :  { %292 = vperm.xlu1 %1019, %v259_v11   ;;  %178 = vmatpush.msra.mxu0 %v163_v18 }
  0x29   :  { %289 = vperm.xlu0 %1018, %v258_v12   ;;  %295 = vperm.xlu2 %1020, %v260_v15   ;;  %v149_v15 = vld [vmem:[%s1559_s0 + $0x50] sm:$0xff] }
  0x2a   :  { %179 = vmatpush.msra.mxu0 %v162_v21  ;;  %v153_v21 = vld [vmem:[%s1559_s0 + $0x70] sm:$0xff] }
  0x2c   :  { %180 = vmatpush.msra.mxu0 %v161_v23 }
  0x2e   :  { %181 = vmatpush.msra.mxu0 %v160_v24 }
  0x30   :  { %301 = vperm.xlu1 %1019, %v262_v19   ;;  %182 = vmatpush.msra.mxu0 %v159_v25  ;;  %v151_v19 = vld [vmem:[%s1559_s0 + $0x60] sm:$0xff] }
  0x31   :  { %298 = vperm.xlu0 %1018, %v261_v20   ;;  %304 = vperm.xlu2 %1020, %v263_v22   ;;  %v152_v20 = vld [vmem:[%s1559_s0 + $0x68] sm:$0xff]  ;;  %v154_v22 = vld [vmem:[%s1559_s0 + $0x78] sm:$0xff] }
  0x32   :  { %183 = vmatpush.msra.mxu0 %v158_v28 }
  0x34   :  { %184 = vmatpush.msra.mxu0 %v157_v30 }
  0x36   :  { %185 = vmatpush.msra.mxu0 %v156_v31  ;;  %v1456_v31 = vld [vmem:[#allocation4 + $0x8] sm:$0xff] }
  0x38   :  { %310 = vperm.xlu1 %1019, %v265_v26   ;;  %186 = vmatpush.msra.mxu0 %v155_v33  ;;  %v1450_v26 = vld [vmem:[#allocation4] sm:$0xff] }
  0x39   :  { %307 = vperm.xlu0 %1018, %v264_v27   ;;  %313 = vperm.xlu2 %1020, %v266_v29  }
  0x3a   :  { %187 = vmatmul.f32.vlgmr.msra.gmra.mxu0 %v139_v34 }
  0x41   :  { %316 = vperm.xlu0 %1018, %v267_v32  }
  0x42   :  { %190 = vmatmul.f32.gmra.mxu0 %v140_v36 }
  0x4a   :  { %193 = vmatmul.f32.gmra.mxu0 %v141_v38 }
  0x52   :  { %196 = vmatmul.f32.gmra.mxu0 %v142_v41 }
  0x5a   :  { %199 = vmatmul.f32.gmra.mxu0 %v143_v48  ;;  %v1471_v48 = vld [vmem:[#allocation4 + $0x20] sm:$0xff] }
  0x62   :  { %202 = vmatmul.f32.gmra.mxu0 %v144_v54 }
  0x6a   :  { %205 = vmatmul.f32.gmra.mxu0 %v145_v58 }
  0x72   :  { %208 = vmatmul.f32.gmra.mxu0 %v146_v62  ;;  %v1486_v62 = vld [vmem:[#allocation4 + $0x38] sm:$0xff] }
  0x73   :  { %v284_v37 = vpop.permute.xlu2 %283 }
  0x74   :  { %vm322_vm10 = vcmp.eq.s32.totalorder %v284_v37, %v1355_v42  ;;  %v1461_v37 = vld [vmem:[#allocation4 + $0x10] sm:$0xff] }
  0x75   :  { %v338_v5 = vsel %vm322_vm10, 1.0, %v1190_v44 }
  0x7a   :  { %211 = vmatmul.f32.gmra.mxu0 %v147_v4 }
  0x7b   :  { %v1349_v39 = vpop.permute.xlu2 %286 }
  0x7c   :  { %vm323_vm13 = vcmp.eq.s32.totalorder %v1349_v39, %v1355_v42 }
  0x7d   :  { %v339_v12 = vsel %vm323_vm13, 1.0, %v1190_v44 }
  0x82   :  { %214 = vmatmul.f32.gmra.mxu0 %v148_v10 }
  0x83   :  { %v296_v43 = vpop.permute.xlu2 %295 }
  0x84   :  { %vm326_vm0 = vcmp.eq.s32.totalorder %v296_v43, %v1355_v42  ;;  %v1466_v43 = vld [vmem:[#allocation4 + $0x18] sm:$0xff] }
  0x85   :  { %v1359_v45 = vsel %vm326_vm0, 1.0, %v1190_v44 }
  0x8a   :  { %v278_v46 = vpop.permute.xlu1 %277  ;;  %217 = vmatmul.f32.gmra.mxu0 %v149_v15 }
  0x8b   :  { %v272_v47 = vpop.permute.xlu0 %271  ;;  %v305_v50 = vpop.permute.xlu2 %304  ;;  %vm320_vm6 = vcmp.eq.s32.totalorder %v278_v46, %v1355_v42 }
  0x8c   :  { %vm318_vm2 = vcmp.eq.s32.totalorder %v272_v47, %v1355_v42  ;;  %vm329_vm3 = vcmp.eq.s32.totalorder %v305_v50, %v1355_v42  ;;  %v336_v59 = vsel %vm320_vm6, 1.0, %v1190_v44 }
  0x8d   :  { %v334_v49 = vsel %vm318_vm2, 1.0, %v1190_v44  ;;  %v1369_v51 = vsel %vm329_vm3, 1.0, %v1190_v44 }
  0x8e   :  { %981 = vmatmul.msk.f32.vlgmr.msra.gmra.mxu1 %vm352_vm1, %v334_v49 }
  0x92   :  { %v281_v52 = vpop.permute.xlu1 %280  ;;  %220 = vmatmul.f32.gmra.mxu0 %v150_v17 }
  0x93   :  { %v275_v53 = vpop.permute.xlu0 %274  ;;  %v314_v56 = vpop.permute.xlu2 %313  ;;  %vm321_vm7 = vcmp.eq.s32.totalorder %v281_v52, %v1355_v42  ;;  %v1476_v52 = vld [vmem:[#allocation4 + $0x28] sm:$0xff] }
  0x94   :  { %vm319_vm4 = vcmp.eq.s32.totalorder %v275_v53, %v1355_v42  ;;  %vm332_vm5 = vcmp.eq.s32.totalorder %v314_v56, %v1355_v42  ;;  %v337_v1 = vsel %vm321_vm7, 1.0, %v1190_v44 }
  0x95   :  { %v335_v55 = vsel %vm319_vm4, 1.0, %v1190_v44  ;;  %v1379_v57 = vsel %vm332_vm5, 1.0, %v1190_v44 }
  0x96   :  { %982 = vmatmul.msk.f32.gmra.mxu1 %vm352_vm1, %v335_v55 }
  0x9a   :  { %v293_v60 = vpop.permute.xlu1 %292  ;;  %223 = vmatmul.f32.gmra.mxu0 %v151_v19  ;;  %v137_v19 = vld [vmem:[#allocation4 + $0x70] sm:$0xff] }
  0x9b   :  { %v290_v61 = vpop.permute.xlu0 %289  ;;  %vm325_vm0 = vcmp.eq.s32.totalorder %v293_v60, %v1355_v42 }
  0x9c   :  { %vm324_vm15 = vcmp.eq.s32.totalorder %v290_v61, %v1355_v42  ;;  %v341_v18 = vsel %vm325_vm0, 1.0, %v1190_v44 }
  0x9d   :  { %v340_v16 = vsel %vm324_vm15, 1.0, %v1190_v44 }
  0x9e   :  { %983 = vmatmul.msk.f32.gmra.mxu1 %vm352_vm1, %v336_v59 }
  0xa2   :  { %v302_v63 = vpop.permute.xlu1 %301  ;;  %226 = vmatmul.f32.gmra.mxu0 %v152_v20  ;;  %v138_v20 = vld [vmem:[#allocation4 + $0x78] sm:$0xff] }
  0xa3   :  { %v299_v0 = vpop.permute.xlu0 %298  ;;  %vm328_vm8 = vcmp.eq.s32.totalorder %v302_v63, %v1355_v42 }
  0xa4   :  { %vm327_vm9 = vcmp.eq.s32.totalorder %v299_v0, %v1355_v42  ;;  %v344_v2 = vsel %vm328_vm8, 1.0, %v1190_v44  ;;  %vm861_vm8 = vcmask 64512  }
  0xa5   :  { %v343_v3 = vsel %vm327_vm9, 1.0, %v1190_v44 }
  0xa6   :  { %984 = vmatmul.msk.f32.gmra.mxu1 %vm352_vm1, %v337_v1 }
  0xaa   :  { %v311_v6 = vpop.permute.xlu1 %310  ;;  %229 = vmatmul.f32.gmra.mxu0 %v153_v21 }
  0xab   :  { %v308_v7 = vpop.permute.xlu0 %307  ;;  %vm331_vm11 = vcmp.eq.s32.totalorder %v311_v6, %v1355_v42 }
  0xac   :  { %vm330_vm12 = vcmp.eq.s32.totalorder %v308_v7, %v1355_v42  ;;  %v347_v8 = vsel %vm331_vm11, 1.0, %v1190_v44 }
  0xad   :  { %v346_v9 = vsel %vm330_vm12, 1.0, %v1190_v44 }
  0xae   :  { %985 = vmatmul.msk.f32.gmra.mxu1 %vm352_vm1, %v338_v5 }
  0xb2   :  { %232 = vmatmul.f32.gmra.mxu0 %v154_v22  ;;  %v136_v22 = vld [vmem:[#allocation4 + $0x68] sm:$0xff] }
  0xb3   :  { %v317_v11 = vpop.permute.xlu0 %316 }
  0xb4   :  { %vm333_vm14 = vcmp.eq.s32.totalorder %v317_v11, %v1355_v42 }
  0xb5   :  { %v349_v14 = vsel %vm333_vm14, 1.0, %v1190_v44 }
  0xb6   :  { %986 = vmatmul.msk.f32.gmra.mxu1 %vm352_vm1, %v339_v12 }
  0xb7   :  { %v188_v23 = vpop.f32.mrf.mxu0 }
  0xb8   :  { %v236_v28 = vmul.f32 %v188_v23, %v1450_v26 }
  0xbe   :  { %987 = vmatmul.msk.f32.gmra.mxu1 %vm352_vm1, %v340_v16 }
  0xbf   :  { %v191_v24 = vpop.f32.mrf.mxu0 }
  0xc0   :  { %v237_v33 = vmul.f32 %v191_v24, %v1456_v31 }
  0xc6   :  { %988 = vmatmul.msk.f32.gmra.mxu1 %vm352_vm1, %v341_v18 }
  0xc7   :  { %v194_v25 = vpop.f32.mrf.mxu0 }
  0xc8   :  { %v238_v38 = vmul.f32 %v194_v25, %v1461_v37  ;;  %v135_v25 = vld [vmem:[#allocation4 + $0x60] sm:$0xff] }
  0xce   :  { %989 = vmatmul.msk.f32.gmra.mxu1 %vm352_vm1, %v1359_v45 }
  0xcf   :  { %v197_v27 = vpop.f32.mrf.mxu0 }
  0xd0   :  { %v239_v44 = vmul.f32 %v197_v27, %v1466_v43 }
  0xd6   :  { %990 = vmatmul.msk.f32.gmra.mxu1 %vm352_vm1, %v343_v3  ;;  %v131_v3 = vld [vmem:[#allocation4 + $0x40] sm:$0xff] }
  0xd7   :  { %v200_v32 = vpop.f32.mrf.mxu0 }
  0xd8   :  { %v240_v49 = vmul.f32 %v200_v32, %v1471_v48 }
  0xde   :  { %991 = vmatmul.msk.f32.gmra.mxu1 %vm352_vm1, %v344_v2 }
  0xdf   :  { %v203_v39 = vpop.f32.mrf.mxu0 }
  0xe0   :  { %v241_v54 = vmul.f32 %v203_v39, %v1476_v52 }
  0xe6   :  { %992 = vmatmul.msk.f32.gmra.mxu1 %vm352_vm1, %v1369_v51 }
  0xe7   :  { %v206_v46 = vpop.f32.mrf.mxu0 }
  0xee   :  { %993 = vmatmul.msk.f32.gmra.mxu1 %vm352_vm1, %v346_v9 }
  0xef   :  { %v209_v53 = vpop.f32.mrf.mxu0 }
  0xf0   :  { %v243_v63 = vmul.f32 %v209_v53, %v1486_v62 }
  0xf6   :  { %994 = vmatmul.msk.f32.gmra.mxu1 %vm352_vm1, %v347_v8 }
  0xf7   :  { %v212_v58 = vpop.f32.mrf.mxu0 }
  0xf8   :  { %v244_v4 = vmul.f32 %v212_v58, %v131_v3 }
  0xfe   :  { %995 = vmatmul.msk.f32.gmra.mxu1 %vm352_vm1, %v1379_v57  ;;  %v1481_v57 = vld [vmem:[#allocation4 + $0x30] sm:$0xff] }
  0xff   :  { %v242_v59 = vmul.f32 %v206_v46, %v1481_v57  ;;  %v215_v0 = vpop.f32.mrf.mxu0 }
 0x106   :  { %996 = vmatmul.msk.f32.gmra.mxu1 %vm352_vm1, %v349_v14 }
 0x107   :  { %v218_v6 = vpop.f32.mrf.mxu0 }
 0x10b   :  { %v418_v29 = vpop.f32.mrf.mxu1 }
 0x10c   :  { %v1454_v30 = vmul.f32 %v418_v29, %v236_v28  ;;  %v134_v28 = vld [vmem:[#allocation4 + $0x58] sm:$0xff] }
 0x10f   :  { %v221_v9 = vpop.f32.mrf.mxu0 }
 0x110   :  { %v247_v39 = vmul.f32 %v221_v9, %v134_v28  ;;  %v597_v9 = vld [vmem:[#allocation10 + $0xd8] sm:$0xff] }
 0x113   :  { %v421_v34 = vpop.f32.mrf.mxu1 }
 0x114   :  { %v1459_v36 = vmul.f32 %v421_v34, %v237_v33 }
 0x117   :  { %v224_v11 = vpop.f32.mrf.mxu0 }
 0x118   :  { %v248_v32 = vmul.f32 %v224_v11, %v135_v25  ;;  %v595_v11 = vld [vmem:[#allocation10 + $0xc8] sm:$0xff] }
 0x11b   :  { %v424_v41 = vpop.f32.mrf.mxu1 }
 0x11c   :  { %v1464_v42 = vmul.f32 %v424_v41, %v238_v38  ;;  %v133_v38 = vld [vmem:[#allocation4 + $0x50] sm:$0xff] }
 0x11d   :  { %v246_v46 = vmul.f32 %v218_v6, %v133_v38 }
 0x11f   :  { %v227_v14 = vpop.f32.mrf.mxu0 }
 0x120   :  { %v249_v27 = vmul.f32 %v227_v14, %v136_v22  ;;  %v594_v14 = vld [vmem:[#allocation10 + $0xc0] sm:$0xff] }
 0x123   :  { %v427_v45 = vpop.f32.mrf.mxu1 }
 0x124   :  { %v1469_v47 = vmul.f32 %v427_v45, %v239_v44  ;;  %v132_v45 = vld [vmem:[#allocation4 + $0x48] sm:$0xff] }
 0x125   :  { %v245_v53 = vmul.f32 %v215_v0, %v132_v45 }
 0x127   :  { %v230_v17 = vpop.f32.mrf.mxu0 }
 0x128   :  { %v250_v23 = vmul.f32 %v230_v17, %v137_v19  ;;  %v577_v17 = vld [vmem:[#allocation10 + $0x38] sm:$0xff] }
 0x12b   :  { %v430_v50 = vpop.f32.mrf.mxu1 }
 0x12c   :  { %v1474_v51 = vmul.f32 %v430_v50, %v240_v49 }
 0x12f   :  { %v233_v21 = vpop.f32.mrf.mxu0 }
 0x130   :  { %v251_v24 = vmul.f32 %v233_v21, %v138_v20  ;;  %v575_v21 = vld [vmem:[#allocation10 + $0x28] sm:$0xff] }
 0x133   :  { %v433_v55 = vpop.f32.mrf.mxu1 }
 0x134   :  { %v1479_v56 = vmul.f32 %v433_v55, %v241_v54 }
 0x13b   :  { %v436_v60 = vpop.f32.mrf.mxu1 }
 0x13c   :  { %v1484_v61 = vmul.f32 %v436_v60, %v242_v59 }
 0x13e   :  { %v528_v6 = vmul.f32 %v1484_v61, %v1481_v57  ;;  %v484_v57 = vshrl.u32 %v268_v40, 7  ;;  %v522_v40 = vmul.f32 %v1454_v30, %v1450_v26  ;;  %v581_v26 = vld [vmem:[#allocation10 + $0x58] sm:$0xff] }
 0x143   :  { %v439_v1 = vpop.f32.mrf.mxu1 }
 0x144   :  { %v1489_v2 = vmul.f32 %v439_v1, %v243_v63 }
 0x14b   :  { %v442_v5 = vpop.f32.mrf.mxu1 }
 0x14c   :  { %v474_v7 = vmul.f32 %v442_v5, %v244_v4  ;;  %v529_v5 = vmul.f32 %v1489_v2, %v1486_v62  ;;  %v525_v62 = vmul.f32 %v1469_v47, %v1466_v43  ;;  %v1191_v43 = vmov 1.0  }
 0x14e   :  { %v530_v0 = vmul.f32 %v474_v7, %v131_v3  ;;  %v526_v3 = vmul.f32 %v1474_v51, %v1471_v48  ;;  %v523_v48 = vmul.f32 %v1459_v36, %v1456_v31  ;;  %v583_v31 = vld [vmem:[#allocation10 + $0x68] sm:$0xff] }
 0x153   :  { %v445_v8 = vpop.f32.mrf.mxu1 }
 0x154   :  { %v475_v60 = vmul.f32 %v445_v8, %v245_v53  ;;  %v527_v8 = vmul.f32 %v1479_v56, %v1476_v52  ;;  %v524_v52 = vmul.f32 %v1464_v42, %v1461_v37  ;;  %v485_v37 = vadd.s32 8, %v484_v57  ;;  %v629_v53 = vld [vmem:[#allocation10 + $0x1d8] sm:$0xff] }
 0x156   :  { %v531_v4 = vmul.f32 %v475_v60, %v132_v45  ;;  %v631_v45 = vld [vmem:[#allocation10 + $0x1e8] sm:$0xff] }
 0x15b   :  { %v448_v10 = vpop.f32.mrf.mxu1 }
 0x15c   :  { %v476_v58 = vmul.f32 %v448_v10, %v246_v46  ;;  %v580_v10 = vld [vmem:[#allocation10 + $0x50] sm:$0xff]  ;;  %v615_v46 = vld [vmem:[#allocation10 + $0x168] sm:$0xff] }
 0x15e   :  { %v532_v1 = vmul.f32 %v476_v58, %v133_v38  ;;  %v570_v38 = vld [vmem:[#allocation10] sm:$0xff] }
 0x163   :  { %v451_v12 = vpop.f32.mrf.mxu1 }
 0x164   :  { %v477_v54 = vmul.f32 %v451_v12, %v247_v39  ;;  %v579_v12 = vld [vmem:[#allocation10 + $0x48] sm:$0xff]  ;;  %v617_v39 = vld [vmem:[#allocation10 + $0x178] sm:$0xff] }
 0x166   :  { %v533_v63 = vmul.f32 %v477_v54, %v134_v28  ;;  %v572_v28 = vld [vmem:[#allocation10 + $0x10] sm:$0xff] }
 0x16b   :  { %v454_v15 = vpop.f32.mrf.mxu1 }
 0x16c   :  { %v478_v49 = vmul.f32 %v454_v15, %v248_v32  ;;  %v578_v15 = vld [vmem:[#allocation10 + $0x40] sm:$0xff]  ;;  %v571_v32 = vld [vmem:[#allocation10 + $0x8] sm:$0xff] }
 0x16e   :  { %v534_v59 = vmul.f32 %v478_v49, %v135_v25  ;;  %v573_v25 = vld [vmem:[#allocation10 + $0x18] sm:$0xff] }
 0x173   :  { %v457_v16 = vpop.f32.mrf.mxu1 }
 0x174   :  { %v479_v41 = vmul.f32 %v457_v16, %v249_v27  ;;  %v593_v16 = vld [vmem:[#allocation10 + $0xb8] sm:$0xff]  ;;  %v588_v27 = vld [vmem:[#allocation10 + $0x90] sm:$0xff] }
 0x176   :  { %v535_v55 = vmul.f32 %v479_v41, %v136_v22  ;;  %v590_v22 = vld [vmem:[#allocation10 + $0xa0] sm:$0xff] }
 0x17b   :  { %v460_v18 = vpop.f32.mrf.mxu1 }
 0x17c   :  { %v480_v33 = vmul.f32 %v460_v18, %v250_v23  ;;  %v592_v18 = vld [vmem:[#allocation10 + $0xb0] sm:$0xff]  ;;  %v574_v23 = vld [vmem:[#allocation10 + $0x20] sm:$0xff] }
 0x17e   :  { %v536_v50 = vmul.f32 %v480_v33, %v137_v19  ;;  %v576_v19 = vld [vmem:[#allocation10 + $0x30] sm:$0xff] }
 0x183   :  { %v463_v29 = vpop.f32.mrf.mxu1 }
 0x184   :  { %v481_v34 = vmul.f32 %v463_v29, %v251_v24  ;;  %v589_v24 = vld [vmem:[#allocation10 + $0x98] sm:$0xff]  ;;  %v587_v29 = vld [vmem:[#allocation10 + $0x88] sm:$0xff] }
 0x186   :  { %493 = vmatpush.msra.mxu2 %v481_v34  ;;  %v537_v44 = vmul.f32 %v481_v34, %v138_v20  ;;  %v591_v20 = vld [vmem:[#allocation10 + $0xa8] sm:$0xff]  ;;  %v633_v34 = vld [vmem:[#allocation10 + $0x1f8] sm:$0xff] }
 0x188   :  { %494 = vmatpush.msra.mxu2 %v480_v33  ;;  %538 = vmatpush.msra.mxu3 %v537_v44  ;;  %v586_v33 = vld [vmem:[#allocation10 + $0x80] sm:$0xff]  ;;  %v616_v44 = vld [vmem:[#allocation10 + $0x170] sm:$0xff] }
 0x18a   :  { %495 = vmatpush.msra.mxu2 %v479_v41  ;;  %539 = vmatpush.msra.mxu3 %v536_v50  ;;  %v632_v41 = vld [vmem:[#allocation10 + $0x1f0] sm:$0xff]  ;;  %v614_v50 = vld [vmem:[#allocation10 + $0x160] sm:$0xff] }
 0x18c   :  { %496 = vmatpush.msra.mxu2 %v478_v49  ;;  %540 = vmatpush.msra.mxu3 %v535_v55  ;;  %v630_v49 = vld [vmem:[#allocation10 + $0x1e0] sm:$0xff]  ;;  %v628_v55 = vld [vmem:[#allocation10 + $0x1d0] sm:$0xff] }
 0x18e   :  { %497 = vmatpush.msra.mxu2 %v477_v54  ;;  %541 = vmatpush.msra.mxu3 %v534_v59  ;;  %v613_v54 = vld [vmem:[#allocation10 + $0x158] sm:$0xff]  ;;  %v627_v59 = vld [vmem:[#allocation10 + $0x1c8] sm:$0xff] }
 0x190   :  { %498 = vmatpush.msra.mxu2 %v476_v58  ;;  %542 = vmatpush.msra.mxu3 %v533_v63  ;;  %v612_v58 = vld [vmem:[#allocation10 + $0x150] sm:$0xff]  ;;  %v626_v63 = vld [vmem:[#allocation10 + $0x1c0] sm:$0xff] }
 0x192   :  { %499 = vmatpush.msra.mxu2 %v475_v60  ;;  %543 = vmatpush.msra.mxu3 %v532_v1  ;;  %v611_v60 = vld [vmem:[#allocation10 + $0x148] sm:$0xff]  ;;  %v610_v1 = vld [vmem:[#allocation10 + $0x140] sm:$0xff] }
 0x194   :  { %500 = vmatpush.msra.mxu2 %v474_v7  ;;  %544 = vmatpush.msra.mxu3 %v531_v4  ;;  %v582_v7 = vld [vmem:[#allocation10 + $0x60] sm:$0xff]  ;;  %v625_v4 = vld [vmem:[#allocation10 + $0x1b8] sm:$0xff] }
 0x196   :  { %501 = vmatpush.msra.mxu2 %v1489_v2  ;;  %545 = vmatpush.msra.mxu3 %v530_v0  ;;  %v599_v2 = vld [vmem:[#allocation10 + $0xe8] sm:$0xff]  ;;  %v609_v0 = vld [vmem:[#allocation10 + $0x138] sm:$0xff] }
 0x198   :  { %502 = vmatpush.msra.mxu2 %v1484_v61  ;;  %546 = vmatpush.msra.mxu3 %v529_v5  ;;  %v1021_v61 = vld [vmem:[#allocation7] ss:$0 sm:$0xff]  ;;  %v624_v5 = vld [vmem:[#allocation10 + $0x1b0] sm:$0xff] }
 0x199   :  { %vm487_vm2 = vcmp.eq.s32.totalorder %v484_v57, %v1021_v61  ;;  %vm488_vm3 = vcmp.eq.s32.totalorder %v485_v37, %v1021_v61  ;;  %v606_v57 = vld [vmem:[#allocation10 + $0x120] sm:$0xff]  ;;  %v621_v61 = vld [vmem:[#allocation10 + $0x198] sm:$0xff] }
 0x19a   :  { %503 = vmatpush.msra.mxu2 %v1479_v56  ;;  %547 = vmatpush.msra.mxu3 %v528_v6  ;;  %v600_v56 = vld [vmem:[#allocation10 + $0xf0] sm:$0xff]  ;;  %v785_v37 = vld [vmem:[#allocation12 + $0xf8] sm:$0xff] }
 0x19b   :  { %v608_v6 = vld [vmem:[#allocation10 + $0x130] sm:$0xff] }
 0x19c   :  { %504 = vmatpush.msra.mxu2 %v1474_v51  ;;  %548 = vmatpush.msra.mxu3 %v527_v8  ;;  %v601_v51 = vld [vmem:[#allocation10 + $0xf8] sm:$0xff]  ;;  %v623_v8 = vld [vmem:[#allocation10 + $0x1a8] sm:$0xff] }
 0x19e   :  { %505 = vmatpush.msra.mxu2 %v1469_v47  ;;  %549 = vmatpush.msra.mxu3 %v526_v3  ;;  %v585_v47 = vld [vmem:[#allocation10 + $0x78] sm:$0xff]  ;;  %v607_v3 = vld [vmem:[#allocation10 + $0x128] sm:$0xff] }
 0x1a0   :  { %506 = vmatpush.msra.mxu2 %v1464_v42  ;;  %550 = vmatpush.msra.mxu3 %v525_v62  ;;  %v584_v42 = vld [vmem:[#allocation10 + $0x70] sm:$0xff]  ;;  %v622_v62 = vld [vmem:[#allocation10 + $0x1a0] sm:$0xff] }
 0x1a2   :  { %507 = vmatpush.msra.mxu2 %v1459_v36  ;;  %551 = vmatpush.msra.mxu3 %v524_v52  ;;  %v598_v36 = vld [vmem:[#allocation10 + $0xe0] sm:$0xff]  ;;  %v605_v52 = vld [vmem:[#allocation10 + $0x118] sm:$0xff] }
 0x1a4   :  { %508 = vmatpush.msra.mxu2 %v1454_v30  ;;  %552 = vmatpush.msra.mxu3 %v523_v48  ;;  %v596_v30 = vld [vmem:[#allocation10 + $0xd0] sm:$0xff] }
 0x1a5   :  { %997 = vmatmul.msk.f32.vlgmr.msra.gmra.mxu2 %vm487_vm2, %v1191_v43  ;;  %v620_v48 = vld [vmem:[#allocation10 + $0x190] sm:$0xff] }
 0x1a6   :  { %553 = vmatpush.msra.mxu3 %v522_v40  ;;  %642 = vmatpush.msrb.mxu2 %v601_v51  ;;  %v604_v51 = vld [vmem:[#allocation10 + $0x110] sm:$0xff]  ;;  %v619_v40 = vld [vmem:[#allocation10 + $0x188] sm:$0xff] }
 0x1a7   :  { %999 = vmatmul.msk.f32.vlgmr.msra.gmra.mxu3 %vm487_vm2, %v1191_v43 }
 0x1a8   :  { %665 = vmatpush.msrb.mxu3 %v585_v47  ;;  %643 = vmatpush.msrb.mxu2 %v600_v56  ;;  %v618_v47 = vld [vmem:[#allocation10 + $0x180] sm:$0xff] }
 0x1a9   :  { %v602_v56 = vld [vmem:[#allocation10 + $0x100] sm:$0xff] }
 0x1aa   :  { %666 = vmatpush.msrb.mxu3 %v584_v42  ;;  %644 = vmatpush.msrb.mxu2 %v599_v2  ;;  %v784_v42 = vld [vmem:[#allocation12 + $0xf0] sm:$0xff]  ;;  %v783_v2 = vld [vmem:[#allocation12 + $0xe8] sm:$0xff] }
 0x1ac   :  { %667 = vmatpush.msrb.mxu3 %v583_v31  ;;  %645 = vmatpush.msrb.mxu2 %v598_v36  ;;  %v769_v31 = vld [vmem:[#allocation12 + $0x78] sm:$0xff]  ;;  %v782_v36 = vld [vmem:[#allocation12 + $0xe0] sm:$0xff] }
 0x1ad   :  { %998 = vmatmul.msk.f32.gmra.mxu2 %vm488_vm3, %v1191_v43 }
 0x1ae   :  { %668 = vmatpush.msrb.mxu3 %v582_v7  ;;  %646 = vmatpush.msrb.mxu2 %v597_v9  ;;  %v768_v9 = vld [vmem:[#allocation12 + $0x70] sm:$0xff] }
 0x1af   :  { %1000 = vmatmul.msk.f32.gmra.mxu3 %vm488_vm3, %v1191_v43  ;;  %v603_v43 = vld [vmem:[#allocation10 + $0x108] sm:$0xff] }
 0x1b0   :  { %669 = vmatpush.msrb.mxu3 %v581_v26  ;;  %647 = vmatpush.msrb.mxu2 %v596_v30  ;;  %v767_v26 = vld [vmem:[#allocation12 + $0x68] sm:$0xff]  ;;  %v766_v30 = vld [vmem:[#allocation12 + $0x60] sm:$0xff] }
 0x1b2   :  { %670 = vmatpush.msrb.mxu3 %v580_v10  ;;  %648 = vmatpush.msrb.mxu2 %v595_v11  ;;  %v763_v11 = vld [vmem:[#allocation12 + $0x48] sm:$0xff] }
 0x1b4   :  { %671 = vmatpush.msrb.mxu3 %v579_v12  ;;  %649 = vmatpush.msrb.mxu2 %v594_v14  ;;  %v762_v14 = vld [vmem:[#allocation12 + $0x40] sm:$0xff] }
 0x1b6   :  { %672 = vmatpush.msrb.mxu3 %v578_v15  ;;  %650 = vmatpush.msrb.mxu2 %v593_v16  ;;  %v761_v15 = vld [vmem:[#allocation12 + $0x38] sm:$0xff]  ;;  %v760_v16 = vld [vmem:[#allocation12 + $0x30] sm:$0xff] }
 0x1b8   :  { %673 = vmatpush.msrb.mxu3 %v577_v17  ;;  %651 = vmatpush.msrb.mxu2 %v592_v18  ;;  %v759_v17 = vld [vmem:[#allocation12 + $0x28] sm:$0xff]  ;;  %v758_v18 = vld [vmem:[#allocation12 + $0x20] sm:$0xff] }
 0x1ba   :  { %674 = vmatpush.msrb.mxu3 %v576_v19  ;;  %652 = vmatpush.msrb.mxu2 %v591_v20  ;;  %v781_v20 = vld [vmem:[#allocation12 + $0xd8] sm:$0xff] }
 0x1bc   :  { %675 = vmatpush.msrb.mxu3 %v575_v21  ;;  %653 = vmatpush.msrb.mxu2 %v590_v22  ;;  %v757_v21 = vld [vmem:[#allocation12 + $0x18] sm:$0xff]  ;;  %v780_v22 = vld [vmem:[#allocation12 + $0xd0] sm:$0xff] }
 0x1be   :  { %676 = vmatpush.msrb.mxu3 %v574_v23  ;;  %654 = vmatpush.msrb.mxu2 %v589_v24  ;;  %v756_v23 = vld [vmem:[#allocation12 + $0x10] sm:$0xff]  ;;  %v779_v24 = vld [vmem:[#allocation12 + $0xc8] sm:$0xff] }
 0x1c0   :  { %677 = vmatpush.msrb.mxu3 %v573_v25  ;;  %655 = vmatpush.msrb.mxu2 %v588_v27  ;;  %v755_v25 = vld [vmem:[#allocation12 + $0x8] sm:$0xff]  ;;  %v778_v27 = vld [vmem:[#allocation12 + $0xc0] sm:$0xff] }
 0x1c2   :  { %678 = vmatpush.msrb.mxu3 %v572_v28  ;;  %656 = vmatpush.msrb.mxu2 %v587_v29  ;;  %v754_v28 = vld [vmem:[#allocation12] sm:$0xff]  ;;  %v777_v29 = vld [vmem:[#allocation12 + $0xb8] sm:$0xff] }
 0x1c4   :  { %679 = vmatpush.msrb.mxu3 %v571_v32  ;;  %657 = vmatpush.msrb.mxu2 %v586_v33  ;;  %v776_v32 = vld [vmem:[#allocation12 + $0xb0] sm:$0xff]  ;;  %v775_v33 = vld [vmem:[#allocation12 + $0xa8] sm:$0xff] }
 0x1c5   :  { %658 = vmatmul.f32.vlgmr.msrb.gmra.mxu2 %v1340_v35 }
 0x1c6   :  { %699 = vmatpush.msra.mxu2 %v633_v34  ;;  %680 = vmatpush.msrb.mxu3 %v570_v38  ;;  %v774_v34 = vld [vmem:[#allocation12 + $0xa0] sm:$0xff]  ;;  %v773_v38 = vld [vmem:[#allocation12 + $0x98] sm:$0xff] }
 0x1c8   :  { %722 = vmatpush.msra.mxu3 %v617_v39  ;;  %700 = vmatpush.msra.mxu2 %v632_v41  ;;  %v772_v39 = vld [vmem:[#allocation12 + $0x90] sm:$0xff]  ;;  %v771_v41 = vld [vmem:[#allocation12 + $0x88] sm:$0xff] }
 0x1ca   :  { %723 = vmatpush.msra.mxu3 %v616_v44  ;;  %701 = vmatpush.msra.mxu2 %v631_v45  ;;  %v770_v44 = vld [vmem:[#allocation12 + $0x80] sm:$0xff] }
 0x1cc   :  { %724 = vmatpush.msra.mxu3 %v615_v46  ;;  %702 = vmatpush.msra.mxu2 %v630_v49  ;;  %v1022_v46 = vld [vmem:[%s1569_s10] ss:$0 sm:$0xff] }
 0x1cd   :  { %661 = vmatmul.f32.gmra.mxu2 %v1307_v13 }
 0x1ce   :  { %725 = vmatpush.msra.mxu3 %v614_v50  ;;  %703 = vmatpush.msra.mxu2 %v629_v53 }
 0x1d0   :  { %726 = vmatpush.msra.mxu3 %v613_v54  ;;  %704 = vmatpush.msra.mxu2 %v628_v55 }
 0x1d2   :  { %727 = vmatpush.msra.mxu3 %v612_v58  ;;  %705 = vmatpush.msra.mxu2 %v627_v59 }
 0x1d4   :  { %728 = vmatpush.msra.mxu3 %v611_v60  ;;  %706 = vmatpush.msra.mxu2 %v626_v63 }
 0x1d6   :  { %729 = vmatpush.msra.mxu3 %v610_v1  ;;  %707 = vmatpush.msra.mxu2 %v625_v4 }
 0x1d8   :  { %730 = vmatpush.msra.mxu3 %v609_v0  ;;  %708 = vmatpush.msra.mxu2 %v624_v5  ;;  %v1023_v0 = vld [vmem:[%s1569_s10 + $0x1] ss:$0 sm:$0xff] }
 0x1da   :  { %731 = vmatpush.msra.mxu3 %v608_v6  ;;  %709 = vmatpush.msra.mxu2 %v623_v8 }
 0x1dc   :  { %732 = vmatpush.msra.mxu3 %v607_v3  ;;  %710 = vmatpush.msra.mxu2 %v622_v62 }
 0x1de   :  { %733 = vmatpush.msra.mxu3 %v606_v57  ;;  %711 = vmatpush.msra.mxu2 %v621_v61 }
 0x1e0   :  { %734 = vmatpush.msra.mxu3 %v605_v52  ;;  %712 = vmatpush.msra.mxu2 %v620_v48 }
 0x1e2   :  { %735 = vmatpush.msra.mxu3 %v604_v51  ;;  %713 = vmatpush.msra.mxu2 %v619_v40 }
 0x1e4   :  { %736 = vmatpush.msra.mxu3 %v603_v43  ;;  %714 = vmatpush.msra.mxu2 %v618_v47 }
 0x1e5   :  { %715 = vmatmul.f32.vlgmr.msra.gmra.mxu2 %v1340_v35  ;;  %v765_v35 = vld [vmem:[#allocation12 + $0x58] sm:$0xff] }
 0x1e6   :  { %737 = vmatpush.msra.mxu3 %v602_v56  ;;  %786 = vmatpush.msrb.mxu2 %v785_v37 }
 0x1e8   :  { %787 = vmatpush.msrb.mxu2 %v784_v42 }
 0x1ea   :  { %788 = vmatpush.msrb.mxu2 %v783_v2 }
 0x1ec   :  { %789 = vmatpush.msrb.mxu2 %v782_v36  ;;  %v1024_v36 = vld [vmem:[%s1569_s10 + $0x2] ss:$0 sm:$0xff] }
 0x1ed   :  { %718 = vmatmul.f32.gmra.mxu2 %v1307_v13  ;;  %v764_v13 = vld [vmem:[#allocation12 + $0x50] sm:$0xff] }
 0x1ee   :  { %790 = vmatpush.msrb.mxu2 %v781_v20 }
 0x1f0   :  { %791 = vmatpush.msrb.mxu2 %v780_v22 }
 0x1f2   :  { %792 = vmatpush.msrb.mxu2 %v779_v24 }
 0x1f4   :  { %793 = vmatpush.msrb.mxu2 %v778_v27 }
 0x1f6   :  { %794 = vmatpush.msrb.mxu2 %v777_v29 }
 0x1f8   :  { %795 = vmatpush.msrb.mxu2 %v776_v32 }
 0x1fa   :  { %796 = vmatpush.msrb.mxu2 %v775_v33 }
 0x1fc   :  { %797 = vmatpush.msrb.mxu2 %v774_v34  ;;  %v1027_v34 = vld [vmem:[%s1569_s10 + $0x4] ss:$0 sm:$0xff] }
 0x1fe   :  { %798 = vmatpush.msrb.mxu2 %v773_v38 }
 0x200   :  { %799 = vmatpush.msrb.mxu2 %v772_v39 }
 0x202   :  { %800 = vmatpush.msrb.mxu2 %v771_v41 }
 0x204   :  { %801 = vmatpush.msrb.mxu2 %v770_v44 }
 0x228   :  { %v510_v7 = vpop.f32.mrf.mxu2 }
 0x229   :  { %681 = vmatmul.f32.vlgmr.msrb.gmra.mxu3 %v510_v7 }
 0x22a   :  { %809 = vmatpush.msrb.mxu3 %v769_v31  ;;  %v555_v12 = vpop.f32.mrf.mxu3 }
 0x22c   :  { %810 = vmatpush.msrb.mxu3 %v768_v9 }
 0x22e   :  { %811 = vmatpush.msrb.mxu3 %v767_v26  ;;  %v835_v26 = vld [vmem:[%s1564_s5] sm:$0xff] }
 0x230   :  { %v513_v10 = vpop.f32.mrf.mxu2  ;;  %812 = vmatpush.msrb.mxu3 %v766_v30  ;;  %v836_v30 = vld [vmem:[%s1565_s6] sm:$0xff] }
 0x231   :  { %684 = vmatmul.f32.gmra.mxu3 %v513_v10  ;;  %v837_v10 = vld [vmem:[%s1565_s6 + $0x8] sm:$0xff] }
 0x232   :  { %813 = vmatpush.msrb.mxu3 %v765_v35  ;;  %v558_v19 = vpop.f32.mrf.mxu3 }
 0x234   :  { %814 = vmatpush.msrb.mxu3 %v764_v13 }
 0x236   :  { %815 = vmatpush.msrb.mxu3 %v763_v11  ;;  %v1025_v11 = vld [vmem:[%s1569_s10 + $0x5] ss:$0 sm:$0xff] }
 0x238   :  { %816 = vmatpush.msrb.mxu3 %v762_v14 }
 0x239   :  { %738 = vmatmul.f32.vlgmr.msra.gmra.mxu3 %v555_v12 }
 0x23a   :  { %817 = vmatpush.msrb.mxu3 %v761_v15 }
 0x23c   :  { %818 = vmatpush.msrb.mxu3 %v760_v16 }
 0x23e   :  { %819 = vmatpush.msrb.mxu3 %v759_v17 }
 0x240   :  { %820 = vmatpush.msrb.mxu3 %v758_v18 }
 0x241   :  { %741 = vmatmul.f32.gmra.mxu3 %v558_v19 }
 0x242   :  { %821 = vmatpush.msrb.mxu3 %v757_v21 }
 0x244   :  { %822 = vmatpush.msrb.mxu3 %v756_v23 }
 0x246   :  { %823 = vmatpush.msrb.mxu3 %v755_v25 }
 0x248   :  { %824 = vmatpush.msrb.mxu3 %v754_v28  ;;  %v659_v45 = vpop.f32.mrf.mxu2  ;;  %v1026_v28 = vld [vmem:[%s1569_s10 + $0x3] ss:$0 sm:$0xff] }
 0x250   :  { %v662_v53 = vpop.f32.mrf.mxu2 }
 0x268   :  { %v716_v1 = vpop.f32.mrf.mxu2 }
 0x270   :  { %v719_v57 = vpop.f32.mrf.mxu2 }
 0x2ac   :  { %v682_v49 = vpop.f32.mrf.mxu3 }
 0x2ad   :  { %v683_v50 = vadd.f32 %v682_v49, %v659_v45 }
 0x2af   :  { %v689_v54 = vadd.f32 %v1022_v46, %v683_v50 }
 0x2b1   :  { %v693_v55 = vmul.f32 0.1, %v689_v54  ;;  %vm691_vm4 = vcmp.gt.f32.partialorder %v689_v54, 0.0 }
 0x2b3   :  { %v695_v58 = vsel %vm691_vm4, %v689_v54, %v693_v55 }
 0x2b4   :  { %v685_v59 = vpop.f32.mrf.mxu3  ;;  %825 = vmatmul.f32.vlgmr.msrb.gmra.mxu3 %v695_v58 }
 0x2b5   :  { %v686_v60 = vadd.f32 %v685_v59, %v662_v53 }
 0x2b7   :  { %v690_v63 = vadd.f32 %v1022_v46, %v686_v60 }
 0x2b9   :  { %vm692_vm5 = vcmp.gt.f32.partialorder %v690_v63, 0.0  ;;  %v694_v4 = vmul.f32 0.1, %v690_v63 }
 0x2bb   :  { %v696_v5 = vsel %vm692_vm5, %v690_v63, %v694_v4 }
 0x2bc   :  { %v739_v6 = vpop.f32.mrf.mxu3  ;;  %828 = vmatmul.f32.gmra.mxu3 %v696_v5 }
 0x2bd   :  { %v740_v8 = vadd.f32 %v739_v6, %v716_v1 }
 0x2bf   :  { %v746_v3 = vadd.f32 %v1023_v0, %v740_v8 }
 0x2c1   :  { %v750_v62 = vmul.f32 0.1, %v746_v3  ;;  %vm748_vm6 = vcmp.gt.f32.partialorder %v746_v3, 0.0 }
 0x2c3   :  { %v752_v61 = vsel %vm748_vm6, %v746_v3, %v750_v62 }
 0x2c4   :  { %v742_v52 = vpop.f32.mrf.mxu3  ;;  %802 = vmatmul.f32.vlgmr.msrb.gmra.mxu2 %v752_v61 }
 0x2c5   :  { %v743_v48 = vadd.f32 %v742_v52, %v719_v57 }
 0x2c7   :  { %v747_v51 = vadd.f32 %v1023_v0, %v743_v48 }
 0x2c9   :  { %vm749_vm7 = vcmp.gt.f32.partialorder %v747_v51, 0.0  ;;  %v751_v40 = vmul.f32 0.1, %v747_v51 }
 0x2cb   :  { %v753_v43 = vsel %vm749_vm7, %v747_v51, %v751_v40 }
 0x2cc   :  { %805 = vmatmul.f32.gmra.mxu2 %v753_v43 }
 0x337   :  { %v826_v47 = vpop.f32.mrf.mxu3 }
 0x33f   :  { %v829_v37 = vpop.f32.mrf.mxu3 }
 0x347   :  { %v803_v56 = vpop.f32.mrf.mxu2 }
 0x348   :  { %v827_v2 = vadd.f32 %v826_v47, %v803_v56 }
 0x34a   :  { %v833_v9 = vadd.f32 %v1024_v36, %v827_v2 }
 0x34f   :  { %v806_v42 = vpop.f32.mrf.mxu2 }
 0x350   :  { %v830_v31 = vadd.f32 %v829_v37, %v806_v42 }
 0x352   :  { %v834_v7 = vadd.f32 %v1024_v36, %v830_v31 }
 0x354   :  { %855 = vmatpush.msrb.mxu1 %v834_v7 }
 0x356   :  { %856 = vmatpush.msrb.mxu1 %v833_v9 }
 0x357   :  { %1001 = vmatmul.msk.f32.vlgmr.msrb.gmra.mxu1 %vm352_vm1, %v835_v26 }
 0x3d4   :  { %v858_v35 = vpop.f32.mrf.mxu1 }
 0x3d5   :  { %883 = vmatpush.msra.mxu1 %v858_v35 }
 0x3d6   :  { %1002 = vmatmul.msk.f32.vlgmr.msra.gmra.mxu1 %vm861_vm8, %v836_v30 }
 0x3de   :  { %1003 = vmatmul.msk.f32.gmra.mxu1 %vm861_vm8, %v837_v10 }
 0x453   :  { %v885_v13 = vpop.f32.mrf.mxu1 }
 0x454   :  { %v892_v12 = vmul.f32 %v1025_v11, %v885_v13 }
 0x456   :  { %v894_v16 = vsub.f32 %v833_v9, %v892_v12 }
 0x458   :  { %v896_v19 = vmul.f32 %v894_v16, %v894_v16 }
 0x45b   :  { %v888_v14 = vpop.f32.mrf.mxu1 }
 0x45c   :  { %v893_v15 = vmul.f32 %v1025_v11, %v888_v14 }
 0x45e   :  { %v895_v17 = vsub.f32 %v834_v7, %v893_v15 }
 0x460   :  { %v897_v18 = vmul.f32 %v895_v17, %v895_v17 }
 0x462   :  { %912 = vmatpush.msra.mxu2 %v897_v18 }
 0x464   :  { %913 = vmatpush.msra.mxu2 %v896_v19 }
 0x465   :  { %1004 = vmatmul.msk.f32.vlgmr.msra.gmra.mxu2 %vm352_vm1, %v835_v26 }
 0x4e8   :  { %v915_v20 = vpop.f32.mrf.mxu2 }
 0x4e9   :  { %v916_v21 = vadd.f32 1e-05, %v915_v20 }
 0x4eb   :  { %1028 = vrsqrt.f32 %v916_v21  ;;  %vm924_vm10 = vweird.f32 %v916_v21 }
 0x4f1   :  { %v1029_v22 = vpop.eup %1028 }
 0x4f2   :  { %v919_v23 = vmul.f32 %v1029_v22, %v916_v21  ;;  %vm925_vm9 = vweird.f32 %v1029_v22 }
 0x4f3   :  { %vm926_vm11 = vmor %vm924_vm10, %vm925_vm9 }
 0x4f4   :  { %v920_v24 = vmul.f32 %v1029_v22, %v919_v23 }
 0x4f6   :  { %v921_v25 = vmul.f32 0.5, %v920_v24 }
 0x4f8   :  { %v922_v27 = vsub.f32 1.5, %v921_v25 }
 0x4fa   :  { %v923_v29 = vmul.f32 %v1029_v22, %v922_v27 }
 0x4fc   :  { %v927_v32 = vsel %vm926_vm11, %v1029_v22, %v923_v29 }
 0x4fd   :  { %v929_v33 = vmul.f32 %v1026_v28, %v927_v32 }
 0x4ff   :  { %945 = vmatpush.msra.mxu3 %v929_v33 }
 0x500   :  { %1005 = vmatmul.msk.f32.vlgmr.msra.gmra.mxu3 %vm861_vm8, %v836_v30 }
 0x508   :  { %1006 = vmatmul.msk.f32.gmra.mxu3 %vm861_vm8, %v837_v10 }
 0x583   :  { %v947_v38 = vpop.f32.mrf.mxu3 }
 0x584   :  { %v953_v39 = vmul.f32 %v947_v38, %v894_v16 }
 0x586   :  { %v956_v41 = vadd.f32 %v1027_v34, %v953_v39 }
 0x588   :  { %958 = vst [vmem:[#allocation13] sm:$0xff] %v956_v41 }
 0x58b   :  { %v950_v44 = vpop.f32.mrf.mxu3 }
 0x58c   :  { %v954_v45 = vmul.f32 %v950_v44, %v895_v17 }
 0x58e   :  { %v957_v46 = vadd.f32 %v1027_v34, %v954_v45 }
 0x590   :  { %959 = vst [vmem:[#allocation13 + $0x8] sm:$0xff] %v957_v46 }
 0x591   :  { %972 = dma.vmem_to_hbm [thread:$0]  %s965_s15, 256, %s967_s17, [#allocation6], %s1184_s3, %s1184_s3, %s1185_s30  }
 0x592   :  { %1180 = dma.done.wait [#allocation6], 256  }
 0x593   :  { %1181 = vsyncadd [#allocation6], 4294967040 }
 0x594   :  { %977 = vsyncpa [#allocation5], 1 }
 0x595   :  { %978 = vsyncpa [#allocation8], 1 }
 0x596   :  { %979 = vsyncpa [#allocation11], 1 }
 0x597   :  { %980 = vsyncpa [#allocation6], 1 }

</bundles_post_ra>
